<compile_context>
chip_gen: v7x
topology: tpu7x:2x2x1
jax: 0.10.0
libtpu: 0.0.40
codegen_flags: <defaults>
</compile_context>

<pallas_src>
import functools

import jax
import jax.numpy as jnp
from jax.experimental import pallas as pl
from jax.experimental.pallas import tpu as pltpu

EPS = 1e-3


def _num_tensorcores_per_chip() -> int:
    """Best-effort TensorCores-per-chip query (megacore chips report 2)."""
    try:
        info = pltpu.get_tpu_info()
        for attr in ("num_cores", "core_count", "num_tensorcores",
                     "tensorcores_per_chip"):
            val = getattr(info, attr, None)
            if isinstance(val, int) and val > 0:
                return val
    except Exception:
        pass
    try:
        kind = jax.devices()[0].device_kind.lower()
        if any(tag in kind for tag in ("v7", "v5p", "v4")):
            return 2
    except Exception:
        pass
    return 1


def _bn_kernel(reduce_axis, x_ref, gamma_ref, beta_ref, o_ref):
    """Normalize one channel block. `reduce_axis` is the sample axis."""
    x = x_ref[...]
    if x.dtype != jnp.float32:
        x = x.astype(jnp.float32)
    inv_s = 1.0 / x.shape[reduce_axis]                        # static python float
    mean = jnp.sum(x, axis=reduce_axis, keepdims=True) * inv_s
    centered = x - mean
    var = jnp.sum(centered * centered, axis=reduce_axis, keepdims=True) * inv_s
    # Fuse gamma into the per-channel scale (row-sized multiply, not tile-sized).
    scale = jax.lax.rsqrt(var + EPS) * gamma_ref[...]
    o_ref[...] = (centered * scale + beta_ref[...]).astype(o_ref.dtype)


def _bn_call(x2d, gamma2d, beta2d, *, reduce_axis, nb):
    """pallas_call over `nb` channel blocks of a 2-D (C, S) or (S, C) view."""
    if reduce_axis == -1:                      # (C, S): channels on sublanes
        c_blk, s = x2d.shape[0] // nb, x2d.shape[1]
        x_spec = pl.BlockSpec((c_blk, s), lambda j: (j, 0))
        g_spec = pl.BlockSpec((c_blk, 1), lambda j: (j, 0))
    else:                                      # (S, C): channels on lanes
        s, c_blk = x2d.shape[0], x2d.shape[1] // nb
        x_spec = pl.BlockSpec((s, c_blk), lambda j: (0, j))
        g_spec = pl.BlockSpec((1, c_blk), lambda j: (0, j))

    return pl.pallas_call(
        functools.partial(_bn_kernel, reduce_axis),
        out_shape=jax.ShapeDtypeStruct(x2d.shape, x2d.dtype),
        grid_spec=pltpu.PrefetchScalarGridSpec(
            num_scalar_prefetch=0,
            grid=(nb,),
            in_specs=[x_spec, g_spec, g_spec],
            out_specs=x_spec,
        ),
        # Normalized output overwrites the input's HBM buffer (safe: every
        # block is fully read into VMEM before its region is written back,
        # and grid blocks touch disjoint channel ranges).
        input_output_aliases={0: 0},
        compiler_params=pltpu.CompilerParams(
            dimension_semantics=("parallel",),
        ),
    )(x2d, gamma2d, beta2d)


def _select_nb(c, requested, align):
    nb = _num_tensorcores_per_chip() if requested is None else int(requested)
    nb = max(nb, 1)
    if c % nb != 0 or (c // nb) % align != 0:
        nb = 1
    return nb


@functools.partial(jax.jit, static_argnames=("nb",), donate_argnums=(0,))
def _bn_nchw_impl(x_nchw, gamma, beta, *, nb):
    n, c, h, w = x_nchw.shape
    s = n * h * w
    # NCHW -> (C, S). For N == 1 (the module's shape) this is a free bitcast;
    # for N > 1 it materializes a real transpose (known cost, see review).
    x_cs = jnp.moveaxis(x_nchw, 1, 0).reshape(c, s)
    out_cs = _bn_call(x_cs, gamma.reshape(c, 1), beta.reshape(c, 1),
                      reduce_axis=-1, nb=nb)
    return jnp.moveaxis(out_cs.reshape(c, n, h, w), 0, 1)


@functools.partial(jax.jit, static_argnames=("nb",), donate_argnums=(0,))
def _bn_nhwc_impl(x_nhwc, gamma, beta, *, nb):
    n, h, w, c = x_nhwc.shape
    s = n * h * w
    x_sc = x_nhwc.reshape(s, c)                # free for any N
    out_sc = _bn_call(x_sc, gamma.reshape(1, c), beta.reshape(1, c),
                      reduce_axis=0, nb=nb)
    return out_sc.reshape(n, h, w, c)


def batchnorm2d(x_nchw, gamma, beta, num_channel_blocks=None):
    """BatchNorm2d forward (training-mode batch stats) on an NCHW input."""
    c = x_nchw.shape[1]
    # Sublane packing of the (c_blk, S) tile depends on dtype width.
    align = {4: 8, 2: 16, 1: 32}.get(jnp.dtype(x_nchw.dtype).itemsize, 8)
    nb = _select_nb(c, num_channel_blocks, align)
    return _bn_nchw_impl(x_nchw, gamma, beta, nb=nb)


def batchnorm2d_nhwc(x_nhwc, gamma, beta, num_channel_blocks=None):
    """Same op on an NHWC input: lane-dense (S, C) view, no transposes."""
    c = x_nhwc.shape[-1]
    nb = _select_nb(c, num_channel_blocks, 128)   # channel block sits on lanes
    return _bn_nhwc_impl(x_nhwc, gamma, beta, nb=nb)


def _reference(x_nchw, gamma, beta):
    mean = jnp.mean(x_nchw, axis=(0, 2, 3), keepdims=True)
    var = jnp.mean((x_nchw - mean) ** 2, axis=(0, 2, 3), keepdims=True)
    g = gamma.reshape(1, -1, 1, 1)
    b = beta.reshape(1, -1, 1, 1)
    return (x_nchw - mean) * jax.lax.rsqrt(var + EPS) * g + b


if __name__ == "__main__":
    key = jax.random.PRNGKey(0)
    kx, kg, kb = jax.random.split(key, 3)

    # Shape from the module's forward: [1, 1536, 7, 7] (C fixed by BatchNorm2d(1536)).
    N, C, H, W = 1, 1536, 7, 7
    x = jax.random.normal(kx, (N, C, H, W), dtype=jnp.float32)
    gamma = 1.0 + 0.1 * jax.random.normal(kg, (C,), dtype=jnp.float32)
    beta = 0.1 * jax.random.normal(kb, (C,), dtype=jnp.float32)

    ref = jax.block_until_ready(_reference(x, gamma, beta))

    # Lane-dense NHWC path (for callers whose layout is already N,H,W,C).
    x_nhwc = jax.block_until_ready(jnp.transpose(x, (0, 2, 3, 1)))  # test setup only
    out_nhwc = jax.block_until_ready(batchnorm2d_nhwc(x_nhwc, gamma, beta))
    assert jnp.allclose(jnp.transpose(out_nhwc, (0, 3, 1, 2)), ref,
                        atol=1e-4, rtol=1e-4), "NHWC path mismatch vs reference"

    # NCHW path matching the PyTorch module's layout. Donates/overwrites x.
    out = jax.block_until_ready(batchnorm2d(x, gamma, beta))
    assert out.shape == (N, C, H, W)
    assert jnp.allclose(out, ref, atol=1e-4, rtol=1e-4), "mismatch vs reference"

    print("KERNEL_OK")
</pallas_src>

<mosaic_0001>
module attributes {stable_mosaic.version = 11 : i64} {
  func.func @_bn_kernel(%arg0: i32, %arg1: memref<49x1536xf32, #tpu.memory_space<vmem>>, %arg2: memref<1x1536xf32, #tpu.memory_space<vmem>>, %arg3: memref<1x1536xf32, #tpu.memory_space<vmem>>, %arg4: memref<49x1536xf32, #tpu.memory_space<vmem>>) attributes {dimension_semantics = [#tpu.dimension_semantics<parallel>], iteration_bounds = array<i64: 1>, scalar_prefetch = 0 : i64, scratch_operands = 0 : i64, tpu.core_type = #tpu.core_type<tc>, window_params = [{transform_indices = @transform_0, window_bounds = array<i64: 49, 1536>}, {transform_indices = @transform_1, window_bounds = array<i64: 1, 1536>}, {transform_indices = @transform_2, window_bounds = array<i64: 1, 1536>}, {transform_indices = @transform_3, window_bounds = array<i64: 49, 1536>}]} {
    %c0 = arith.constant 0 : index
    %c0_0 = arith.constant 0 : index
    %0 = vector.load %arg1[%c0, %c0_0] : memref<49x1536xf32, #tpu.memory_space<vmem>>, vector<49x1536xf32>
    %cst = arith.constant dense<0.000000e+00> : vector<1536xf32>
    %1 = vector.multi_reduction <add>, %0, %cst [0] : vector<49x1536xf32> to vector<1536xf32>
    %2 = vector.shape_cast %1 : vector<1536xf32> to vector<1x1536xf32>
    %cst_1 = arith.constant 0.0204081628 : f32
    %3 = vector.broadcast %cst_1 : f32 to vector<1x1536xf32>
    %4 = arith.mulf %2, %3 : vector<1x1536xf32>
    %5 = vector.broadcast %4 : vector<1x1536xf32> to vector<49x1536xf32>
    %6 = arith.subf %0, %5 : vector<49x1536xf32>
    %7 = arith.mulf %6, %6 : vector<49x1536xf32>
    %cst_2 = arith.constant dense<0.000000e+00> : vector<1536xf32>
    %8 = vector.multi_reduction <add>, %7, %cst_2 [0] : vector<49x1536xf32> to vector<1536xf32>
    %9 = vector.shape_cast %8 : vector<1536xf32> to vector<1x1536xf32>
    %cst_3 = arith.constant 0.0204081628 : f32
    %10 = vector.broadcast %cst_3 : f32 to vector<1x1536xf32>
    %11 = arith.mulf %9, %10 : vector<1x1536xf32>
    %cst_4 = arith.constant 1.000000e-03 : f32
    %12 = vector.broadcast %cst_4 : f32 to vector<1x1536xf32>
    %13 = arith.addf %11, %12 : vector<1x1536xf32>
    %14 = math.rsqrt %13 : vector<1x1536xf32>
    %c0_5 = arith.constant 0 : index
    %c0_6 = arith.constant 0 : index
    %15 = vector.load %arg2[%c0_5, %c0_6] : memref<1x1536xf32, #tpu.memory_space<vmem>>, vector<1x1536xf32>
    %16 = arith.mulf %14, %15 : vector<1x1536xf32>
    %17 = vector.broadcast %16 : vector<1x1536xf32> to vector<49x1536xf32>
    %18 = arith.mulf %6, %17 : vector<49x1536xf32>
    %c0_7 = arith.constant 0 : index
    %c0_8 = arith.constant 0 : index
    %19 = vector.load %arg3[%c0_7, %c0_8] : memref<1x1536xf32, #tpu.memory_space<vmem>>, vector<1x1536xf32>
    %20 = vector.broadcast %19 : vector<1x1536xf32> to vector<49x1536xf32>
    %21 = arith.addf %18, %20 : vector<49x1536xf32>
    %c0_9 = arith.constant 0 : index
    %c0_10 = arith.constant 0 : index
    %22 = vector.load %arg4[%c0_9, %c0_10] : memref<49x1536xf32, #tpu.memory_space<vmem>>, vector<49x1536xf32>
    tpu.vector_store %arg4[%c0_9, %c0_10], %21 {strides = array<i32>} : memref<49x1536xf32, #tpu.memory_space<vmem>>, vector<49x1536xf32>,
    return
  }
  func.func @transform_0(%arg0: i32) -> (i32, i32) {
    %c0_i32 = arith.constant 0 : i32
    %c0_i32_0 = arith.constant 0 : i32
    return %c0_i32, %arg0 : i32, i32
  }
  func.func @transform_1(%arg0: i32) -> (i32, i32) {
    %c0_i32 = arith.constant 0 : i32
    %c0_i32_0 = arith.constant 0 : i32
    return %c0_i32, %arg0 : i32, i32
  }
  func.func @transform_2(%arg0: i32) -> (i32, i32) {
    %c0_i32 = arith.constant 0 : i32
    %c0_i32_0 = arith.constant 0 : i32
    return %c0_i32, %arg0 : i32, i32
  }
  func.func @transform_3(%arg0: i32) -> (i32, i32) {
    %c0_i32 = arith.constant 0 : i32
    %c0_i32_0 = arith.constant 0 : i32
    return %c0_i32, %arg0 : i32, i32
  }
}

</mosaic_0001>

<bundles_post_ra>
// kernel: _bn_nhwc_impl.1
= control target key start
LH: loop header
LB: loop body
LE: loop exit
PB: predicated region body
PF: predicated region fallthrough
CT: control target
= control target key end

     0   :  { %v631_v0 = vlaneseq  ;;  %vm103_vm0 = vcmask 1040384   ;;  %s2728_s0 = inlined_call_operand.vmem [shape: f32[49,1536], index: 0, kind: input, shape index: {}, may-alias: {0,3}]   ;;  %s2729_s1 = inlined_call_operand.vmem [shape: f32[1,1536], index: 1, kind: input, shape index: {}]   ;;  %s2730_s2 = inlined_call_operand.vmem [shape: f32[1,1536], index: 2, kind: input, shape index: {}]   ;;  %s2731_s3 = inlined_call_operand.vmem [shape: f32[49,1536], index: 3, kind: output, shape index: {}, may-alias: {0,3}]  }
   0x1   :  { %v1118_v1 = vld [vmem:[%s2728_s0] sm:$0xff]  ;;  %v1161_v12 = vld [vmem:[%s2728_s0 + $0x8] sm:$0xff]  ;;  %v1211_v26 = vld [vmem:[%s2728_s0 + $0x10] sm:$0xff] }
   0x2   :  { %v1123_v2 = vld [vmem:[%s2728_s0 + $0x60] sm:$0xff]  ;;  %v1137_v6 = vshrl.u32 %v631_v0, 7  ;;  %v1166_v13 = vld [vmem:[%s2728_s0 + $0x68] sm:$0xff]  ;;  %v1216_v27 = vld [vmem:[%s2728_s0 + $0x70] sm:$0xff] }
   0x3   :  { %v1128_v3 = vld [vmem:[%s2728_s0 + $0xc0] sm:$0xff]  ;;  %v98_v5 = vadd.f32 %v1123_v2, %v1118_v1  ;;  %v1171_v14 = vld [vmem:[%s2728_s0 + $0xc8] sm:$0xff]  ;;  %v112_v19 = vadd.f32 %v1166_v13, %v1161_v12  ;;  %v1237_v34 = vld [vmem:[%s2728_s0 + $0xd0] sm:$0xff]  ;;  %v125_v35 = vadd.f32 %v1216_v27, %v1211_v26 }
   0x4   :  { %v1133_v4 = vld [vmem:[%s2728_s0 + $0x120] sm:$0xff]  ;;  %v1156_v11 = vsub.s32 0, %v1137_v6  ;;  %v1174_v15 = vsub.s32 1, %v1137_v6  ;;  %v1186_v18 = vld [vmem:[%s2728_s0 + $0x128] sm:$0xff]  ;;  %v1191_v20 = vsub.s32 2, %v1137_v6  ;;  %v1194_v21 = vsub.s32 3, %v1137_v6 }
   0x5   :  { %v1142_v7 = vld [vmem:[%s2728_s0 + $0x240] sm:$0x1]  ;;  %v99_v10 = vadd.f32 %v98_v5, %v1128_v3  ;;  %v1206_v25 = vld [vmem:[%s2728_s0 + $0x248] sm:$0x1]  ;;  %v649_v28 = vsub.s32 4, %v1137_v6  ;;  %v113_v31 = vadd.f32 %v112_v19, %v1171_v14  ;;  %v1249_v38 = vld [vmem:[%s2728_s0 + $0x130] sm:$0xff]  ;;  %v126_v45 = vadd.f32 %v125_v35, %v1237_v34 }
   0x6   :  { %v1147_v8 = vld [vmem:[%s2729_s1] sm:$0xff]  ;;  %2833 = vst [vmem:[#allocation3_spill] sm:$0xff] %v1156_v11  ;;  %2834 = vst [vmem:[#allocation4_spill] sm:$0xff] %v1174_v15  ;;  %v104_v17 = vsel %vm103_vm0, %v1142_v7, 0.0  ;;  %v1227_v30 = vld [vmem:[%s2728_s0 + $0x188] sm:$0xff]  ;;  %v117_v32 = vsel %vm103_vm0, %v1206_v25, 0.0 }
   0x7   :  { %2832 = vst [vmem:[#allocation2_spill] sm:$0xff] %v1147_v8  ;;  %v1152_v9 = vld [vmem:[%s2730_s2] sm:$0xff]  ;;  %2835 = vst [vmem:[#allocation5_spill] sm:$0xff] %v1191_v20  ;;  %v100_v22 = vadd.f32 %v99_v10, %v1133_v4  ;;  %v1254_v39 = vld [vmem:[%s2728_s0 + $0x250] sm:$0x1]  ;;  %v114_v44 = vadd.f32 %v113_v31, %v1186_v18  ;;  %v1311_v56 = vrot.slane %v1147_v8, %v649_v28  ;;  %v653_v63 = vsub.s32 5, %v1137_v6 }
   0x8   :  { %v1179_v16 = vld [vmem:[%s2728_s0 + $0x180] sm:$0xff]  ;;  %2836 = vst [vmem:[#allocation6_spill] sm:$0xff] %v1194_v21  ;;  %v1201_v24 = vrot.slane %v1152_v9, %v1156_v11  ;;  %v1244_v37 = vrot.slane %v1152_v9, %v1174_v15  ;;  %v1260_v41 = vrot.slane %v1152_v9, %v1191_v20  ;;  %v1265_v42 = vld [vmem:[%s2728_s0 + $0x18] sm:$0xff]  ;;  %v1270_v43 = vld [vmem:[%s2728_s0 + $0x1e8] sm:$0xff]  ;;  %v130_v46 = vsel %vm103_vm0, %v1254_v39, 0.0 }
   0x9   :  { %v1222_v29 = vld [vmem:[%s2728_s0 + $0x1e0] sm:$0xff]  ;;  %v101_v36 = vadd.f32 %v100_v22, %v1179_v16  ;;  %v1279_v47 = vld [vmem:[%s2728_s0 + $0x78] sm:$0xff]  ;;  %v1292_v51 = vld [vmem:[%s2728_s0 + $0x190] sm:$0xff]  ;;  %v1308_v55 = vrot.slane %v1152_v9, %v1194_v21  ;;  %2841 = vst [vmem:[#allocation11_spill] sm:$0xff] %v1311_v56  ;;  %v115_v57 = vadd.f32 %v114_v44, %v1227_v30  ;;  %v127_v58 = vadd.f32 %v126_v45, %v1249_v38 }
   0xa   :  { %2837 = vst [vmem:[#allocation7_spill] sm:$0xff] %v1201_v24  ;;  %2838 = vst [vmem:[#allocation8_spill] sm:$0xff] %v1244_v37  ;;  %v1284_v48 = vld [vmem:[%s2728_s0 + $0xd8] sm:$0xff]  ;;  %v138_v54 = vadd.f32 %v1279_v47, %v1265_v42  ;;  %v1318_v59 = vld [vmem:[%s2728_s0 + $0x20] sm:$0xff]  ;;  %v1331_v62 = vrot.slane %v1152_v9, %v649_v28  ;;  %v1388_v23 = vrot.slane %v1152_v9, %v653_v63 }
   0xb   :  { %2839 = vst [vmem:[#allocation9_spill] sm:$0xff] %v1260_v41  ;;  %v102_v50 = vadd.f32 %v101_v36, %v1222_v29  ;;  %v1297_v52 = vld [vmem:[%s2728_s0 + $0x138] sm:$0xff]  ;;  %2840 = vst [vmem:[#allocation10_spill] sm:$0xff] %v1308_v55  ;;  %v1323_v60 = vld [vmem:[%s2728_s0 + $0x80] sm:$0xff]  ;;  %v116_v31 = vadd.f32 %v115_v57, %v1270_v43  ;;  %v128_v35 = vadd.f32 %v127_v58, %v1292_v51 }
   0xc   :  { %v1302_v53 = vld [vmem:[%s2728_s0 + $0x258] sm:$0x1]  ;;  %v1328_v61 = vld [vmem:[%s2728_s0 + $0xe0] sm:$0xff]  ;;  %2842 = vst [vmem:[#allocation12_spill] sm:$0xff] %v1331_v62  ;;  %v1337_v5 = vld [vmem:[%s2728_s0 + $0x1f0] sm:$0xff]  ;;  %v139_v19 = vadd.f32 %v138_v54, %v1284_v48  ;;  %v1373_v54 = vrot.slane %v1147_v8, %v653_v63 }
   0xd   :  { %v105_v0 = vadd.f32 %v104_v17, %v102_v50  ;;  %v1342_v10 = vld [vmem:[%s2728_s0 + $0x198] sm:$0xff]  ;;  %v1348_v22 = vld [vmem:[%s2728_s0 + $0x140] sm:$0xff]  ;;  %v151_v17 = vadd.f32 %v1323_v60, %v1318_v59  ;;  %v143_v36 = vsel %vm103_vm0, %v1302_v53, 0.0  ;;  %v1365_v45 = vld [vmem:[%s2728_s0 + $0x28] sm:$0xff]  ;;  %2848 = vst [vmem:[#allocation18_spill] sm:$0xff] %v1388_v23  ;;  %v118_v28 = vadd.f32 %v117_v32, %v116_v31 }
   0xe   :  { %v1360_v44 = vld [vmem:[%s2728_s0 + $0x260] sm:$0x1]  ;;  %2844 = vst [vmem:[#allocation14_spill] sm:$0xff] %v1365_v45  ;;  %v1370_v50 = vld [vmem:[%s2728_s0 + $0x88] sm:$0xff]  ;;  %2846 = vst [vmem:[#allocation16_spill] sm:$0xff] %v1373_v54  ;;  %v140_v49 = vadd.f32 %v139_v19, %v1297_v52  ;;  %v129_v54 = vadd.f32 %v128_v35, %v1337_v5 }
   0xf   :  { %2843 = vst [vmem:[#allocation13_spill] sm:$0xff] %v1360_v44  ;;  %2845 = vst [vmem:[#allocation15_spill] sm:$0xff] %v1370_v50  ;;  %v106_v57 = vrot.slane %v105_v0, 4  ;;  %v1378_v58 = vld [vmem:[%s2728_s0 + $0x1f8] sm:$0xff]  ;;  %v152_v40 = vadd.f32 %v151_v17, %v1328_v61  ;;  %v1385_v33 = vld [vmem:[%s2728_s0 + $0xe8] sm:$0xff]  ;;  %v156_v19 = vsel %vm103_vm0, %v1360_v44, 0.0  ;;  %v164_v63 = vadd.f32 %v1370_v50, %v1365_v45 }
  0x10   :  { %2847 = vst [vmem:[#allocation17_spill] sm:$0xff] %v1385_v33  ;;  %v1394_v62 = vld [vmem:[%s2728_s0 + $0x1a0] sm:$0xff]  ;;  %v1401_v17 = vld [vmem:[%s2728_s0 + $0x268] sm:$0x1]  ;;  %v1408_v32 = vld [vmem:[%s2728_s0 + $0x30] sm:$0xff]  ;;  %v141_v35 = vadd.f32 %v140_v49, %v1342_v10 }
  0x11   :  { %2849 = vst [vmem:[#allocation19_spill] sm:$0xff] %v1401_v17  ;;  %2850 = vst [vmem:[#allocation20_spill] sm:$0xff] %v1408_v32  ;;  %v107_v31 = vadd.f32 %v106_v57, %v105_v0  ;;  %v153_v23 = vadd.f32 %v152_v40, %v1348_v22  ;;  %v1415_v56 = vld [vmem:[%s2728_s0 + $0x148] sm:$0xff]  ;;  %v1420_v55 = vld [vmem:[%s2728_s0 + $0x90] sm:$0xff]  ;;  %v2854_v0 = vsub.s32 6, %v1137_v6  ;;  %v119_v40 = vrot.slane %v118_v28, 4 }
  0x12   :  { %2851 = vst [vmem:[#allocation21_spill] sm:$0xff] %v1415_v56  ;;  %2852 = vst [vmem:[#allocation22_spill] sm:$0xff] %v1420_v55  ;;  %v1425_v21 = vld [vmem:[%s2728_s0 + $0xf0] sm:$0xff]  ;;  %v131_v57 = vadd.f32 %v130_v46, %v129_v54  ;;  %v1435_v41 = vld [vmem:[%s2728_s0 + $0x200] sm:$0xff]  ;;  %v165_v20 = vadd.f32 %v164_v63, %v1385_v33  ;;  %v177_v24 = vadd.f32 %v1420_v55, %v1408_v32  ;;  %v169_v63 = vsel %vm103_vm0, %v1401_v17, 0.0 }
  0x13   :  { %2853 = vst [vmem:[#allocation23_spill] sm:$0xff] %v1425_v21  ;;  %v1430_v49 = vrot.slane %v1147_v8, %v2854_v0  ;;  %2856 = vst [vmem:[#allocation25_spill] sm:$0xff] %v1435_v41  ;;  %v1441_v37 = vld [vmem:[%s2728_s0 + $0x270] sm:$0x1]  ;;  %v108_v15 = vrot.slane %v107_v31, 2  ;;  %v142_v0 = vadd.f32 %v141_v35, %v1378_v58  ;;  %v154_v46 = vadd.f32 %v153_v23, %v1394_v62  ;;  %v1450_v54 = vld [vmem:[%s2728_s0 + $0x1a8] sm:$0xff] }
  0x14   :  { %2857 = vst [vmem:[#allocation26_spill] sm:$0xff] %v1441_v37  ;;  %2858 = vst [vmem:[#allocation27_spill] sm:$0xff] %v1450_v54  ;;  %v120_v11 = vadd.f32 %v119_v40, %v118_v28  ;;  %v132_v55 = vrot.slane %v131_v57, 4  ;;  %v166_v32 = vadd.f32 %v165_v20, %v1415_v56  ;;  %v178_v35 = vadd.f32 %v177_v24, %v1425_v21  ;;  %v1464_v23 = vld [vmem:[%s2728_s0 + $0x38] sm:$0xff]  ;;  %v1475_v20 = vld [vmem:[%s2728_s0 + $0x208] sm:$0xff] }
  0x15   :  { %2855 = vst [vmem:[#allocation24_spill] sm:$0xff] %v1430_v49  ;;  %v1457_v49 = vld [vmem:[%s2728_s0 + $0x150] sm:$0xff]  ;;  %2860 = vst [vmem:[#allocation29_spill] sm:$0xff] %v1464_v23  ;;  %v1469_v8 = vld [vmem:[%s2728_s0 + $0x98] sm:$0xff]  ;;  %v109_v17 = vadd.f32 %v108_v15, %v107_v31  ;;  %v144_v33 = vadd.f32 %v143_v36, %v142_v0  ;;  %v155_v50 = vadd.f32 %v154_v46, %v1435_v41  ;;  %v182_v28 = vsel %vm103_vm0, %v1441_v37, 0.0 }
  0x16   :  { %2859 = vst [vmem:[#allocation28_spill] sm:$0xff] %v1457_v49  ;;  %2861 = vst [vmem:[#allocation30_spill] sm:$0xff] %v1469_v8  ;;  %v1480_v24 = vld [vmem:[%s2728_s0 + $0x1b0] sm:$0xff]  ;;  %v121_v40 = vrot.slane %v120_v11, 2  ;;  %v133_v21 = vadd.f32 %v132_v55, %v131_v57  ;;  %v167_v15 = vadd.f32 %v166_v32, %v1450_v54  ;;  %v179_v36 = vadd.f32 %v178_v35, %v1457_v49  ;;  %v1489_v31 = vld [vmem:[%s2728_s0 + $0xf8] sm:$0xff] }
  0x17   :  { %2862 = vst [vmem:[#allocation31_spill] sm:$0xff] %v1475_v20  ;;  %2863 = vst [vmem:[#allocation32_spill] sm:$0xff] %v1480_v24  ;;  %v110_v0 = vrot.slane %v109_v17, 1  ;;  %v145_v46 = vrot.slane %v144_v33, 4  ;;  %v157_v56 = vadd.f32 %v156_v19, %v155_v50  ;;  %v190_v45 = vadd.f32 %v1469_v8, %v1464_v23  ;;  %v1497_v55 = vld [vmem:[%s2728_s0 + $0x210] sm:$0xff]  ;;  %v1503_v50 = vld [vmem:[%s2728_s0 + $0x158] sm:$0xff] }
  0x18   :  { %v122_v44 = vadd.f32 %v121_v40, %v120_v11  ;;  %v134_v41 = vrot.slane %v133_v21, 2  ;;  %v168_v37 = vadd.f32 %v167_v15, %v1475_v20  ;;  %v180_v32 = vadd.f32 %v179_v36, %v1480_v24 }
  0x19   :  { %v111_v57 = vadd.f32 %v110_v0, %v109_v17  ;;  %v146_v35 = vadd.f32 %v145_v46, %v144_v33  ;;  %v158_v49 = vrot.slane %v157_v56, 4  ;;  %v191_v11 = vadd.f32 %v190_v45, %v1489_v31 }
  0x1a   :  { %v123_v19 = vrot.slane %v122_v44, 1  ;;  %v135_v40 = vadd.f32 %v134_v41, %v133_v21  ;;  %v170_v15 = vadd.f32 %v169_v63, %v168_v37  ;;  %v2864_v8 = vsub.s32 6, %v1137_v6 }
  0x1b   :  { %v255_v20 = vmul.f32 0.020408163, %v111_v57  ;;  %v147_v36 = vrot.slane %v146_v35, 2  ;;  %v159_v17 = vadd.f32 %v158_v49, %v157_v56  ;;  %v181_v33 = vadd.f32 %v180_v32, %v1497_v55 }
  0x1c   :  { %v1509_v23 = vrot.slane %v1152_v9, %v2864_v8  ;;  %v124_v0 = vadd.f32 %v123_v19, %v122_v44  ;;  %v136_v46 = vrot.slane %v135_v40, 1  ;;  %v171_v24 = vrot.slane %v170_v15, 4 }
  0x1d   :  { %v1513_v54 = vadd.f32 %v191_v11, %v1503_v50  ;;  %v1516_v45 = vsub.f32 %v1118_v1, %v255_v20  ;;  %v1519_v21 = vsub.f32 %v1123_v2, %v255_v20  ;;  %v1522_v8 = vsub.f32 %v1128_v3, %v255_v20 }
  0x1e   :  { %2865 = vst [vmem:[#allocation33_spill] sm:$0xff] %v1509_v23  ;;  %v1525_v37 = vsub.f32 %v1133_v4, %v255_v20  ;;  %v1528_v41 = vsub.f32 %v1179_v16, %v255_v20  ;;  %v1531_v56 = vsub.f32 %v1222_v29, %v255_v20  ;;  %v1534_v44 = vsub.f32 %v1142_v7, %v255_v20 }
  0x1f   :  { %2866 = vst [vmem:[#allocation34_spill] sm:$0xff] %v1519_v21  ;;  %2867 = vst [vmem:[#allocation35_spill] sm:$0xff] %v1522_v8  ;;  %v256_v1 = vmul.f32 0.020408163, %v124_v0  ;;  %v351_v2 = vmul.f32 %v1516_v45, %v1516_v45  ;;  %v363_v3 = vmul.f32 %v1519_v21, %v1519_v21  ;;  %v375_v4 = vmul.f32 %v1522_v8, %v1522_v8 }
  0x20   :  { %2868 = vst [vmem:[#allocation36_spill] sm:$0xff] %v1525_v37  ;;  %2869 = vst [vmem:[#allocation37_spill] sm:$0xff] %v1528_v41  ;;  %v183_v49 = vadd.f32 %v182_v28, %v181_v33  ;;  %v387_v16 = vmul.f32 %v1525_v37, %v1525_v37  ;;  %v399_v29 = vmul.f32 %v1528_v41, %v1528_v41 }
  0x21   :  { %2870 = vst [vmem:[#allocation38_spill] sm:$0xff] %v1531_v56  ;;  %2871 = vst [vmem:[#allocation39_spill] sm:$0xff] %v1534_v44  ;;  %v423_v7 = vmul.f32 %v1534_v44, %v1534_v44  ;;  %v1549_v63 = vsub.f32 %v1161_v12, %v256_v1  ;;  %v435_v20 = vadd.f32 %v363_v3, %v351_v2 }
  0x22   :  { %v1552_v32 = vsub.f32 %v1166_v13, %v256_v1  ;;  %v1555_v57 = vsub.f32 %v1171_v14, %v256_v1  ;;  %v1558_v28 = vsub.f32 %v1186_v18, %v256_v1  ;;  %v411_v11 = vmul.f32 %v1531_v56, %v1531_v56 }
  0x23   :  { %v1563_v19 = vsub.f32 %v1227_v30, %v256_v1  ;;  %v1566_v33 = vsub.f32 %v1270_v43, %v256_v1  ;;  %v1569_v12 = vsub.f32 %v1206_v25, %v256_v1  ;;  %v436_v13 = vadd.f32 %v435_v20, %v375_v4 }
  0x24   :  { %2872 = vst [vmem:[#allocation40_spill] sm:$0xff] %v1552_v32  ;;  %2873 = vst [vmem:[#allocation41_spill] sm:$0xff] %v1555_v57  ;;  %v352_v14 = vmul.f32 %v1549_v63, %v1549_v63  ;;  %v364_v18 = vmul.f32 %v1552_v32, %v1552_v32  ;;  %v376_v0 = vmul.f32 %v1555_v57, %v1555_v57  ;;  %v440_v2 = vsel %vm103_vm0, %v423_v7, 0.0 }
  0x25   :  { %2874 = vst [vmem:[#allocation42_spill] sm:$0xff] %v1558_v28  ;;  %2875 = vst [vmem:[#allocation43_spill] sm:$0xff] %v1563_v19  ;;  %v388_v30 = vmul.f32 %v1558_v28, %v1558_v28  ;;  %v400_v43 = vmul.f32 %v1563_v19, %v1563_v19  ;;  %v424_v25 = vmul.f32 %v1569_v12, %v1569_v12  ;;  %v160_v56 = vrot.slane %v159_v17, 2 }
  0x26   :  { %2876 = vst [vmem:[#allocation44_spill] sm:$0xff] %v1566_v33  ;;  %2877 = vst [vmem:[#allocation45_spill] sm:$0xff] %v1569_v12  ;;  %v437_v1 = vadd.f32 %v436_v13, %v387_v16  ;;  %v448_v3 = vadd.f32 %v364_v18, %v352_v14  ;;  %v137_v4 = vadd.f32 %v136_v46, %v135_v40  ;;  %v184_v37 = vrot.slane %v183_v49, 4 }
  0x27   :  { %v148_v20 = vadd.f32 %v147_v36, %v146_v35  ;;  %v412_v44 = vmul.f32 %v1566_v33, %v1566_v33  ;;  %v172_v41 = vadd.f32 %v171_v24, %v170_v15  ;;  %v453_v28 = vsel %vm103_vm0, %v424_v25, 0.0  ;;  %v1596_v24 = vld [vmem:[%s2728_s0 + $0x1b8] sm:$0xff]  ;;  %v2909_v33 = vld [vmem:[#allocation20_spill] sm:$0xff] }
  0x28   :  { %v438_v7 = vadd.f32 %v437_v1, %v399_v29  ;;  %v449_v57 = vadd.f32 %v448_v3, %v376_v0  ;;  %v257_v8 = vmul.f32 0.020408163, %v137_v4  ;;  %v161_v19 = vadd.f32 %v160_v56, %v159_v17 }
  0x29   :  { %v149_v23 = vrot.slane %v148_v20, 1  ;;  %v173_v32 = vrot.slane %v172_v41, 2  ;;  %v185_v21 = vadd.f32 %v184_v37, %v183_v49 }
  0x2a   :  { %v439_v12 = vadd.f32 %v438_v7, %v411_v11  ;;  %v450_v16 = vadd.f32 %v449_v57, %v388_v30  ;;  %v1588_v40 = vsub.f32 %v1211_v26, %v257_v8  ;;  %v1591_v35 = vsub.f32 %v1216_v27, %v257_v8 }
  0x2b   :  { %v1599_v15 = vsub.f32 %v1237_v34, %v257_v8  ;;  %v1602_v36 = vsub.f32 %v1249_v38, %v257_v8  ;;  %v1605_v17 = vsub.f32 %v1292_v51, %v257_v8  ;;  %v1608_v26 = vsub.f32 %v1337_v5, %v257_v8 }
  0x2c   :  { %v441_v46 = vadd.f32 %v440_v2, %v439_v12  ;;  %v451_v27 = vadd.f32 %v450_v16, %v400_v43  ;;  %v1611_v37 = vsub.f32 %v1254_v39, %v257_v8  ;;  %v353_v56 = vmul.f32 %v1588_v40, %v1588_v40 }
  0x2d   :  { %2878 = vst [vmem:[#allocation46_spill] sm:$0xff] %v1602_v36  ;;  %2879 = vst [vmem:[#allocation47_spill] sm:$0xff] %v1605_v17  ;;  %v365_v34 = vmul.f32 %v1591_v35, %v1591_v35  ;;  %v377_v38 = vmul.f32 %v1599_v15, %v1599_v15  ;;  %v389_v51 = vmul.f32 %v1602_v36, %v1602_v36  ;;  %v162_v12 = vrot.slane %v161_v19, 1  ;;  %v2932_v36 = vld [vmem:[#allocation6_spill] sm:$0xff] }
  0x2e   :  { %2880 = vst [vmem:[#allocation48_spill] sm:$0xff] %v1608_v26  ;;  %2881 = vst [vmem:[#allocation49_spill] sm:$0xff] %v1611_v37  ;;  %v193_v5 = vadd.f32 %v1513_v54, %v1596_v24  ;;  %v442_v49 = vrot.slane %v441_v46, 4  ;;  %v452_v29 = vadd.f32 %v451_v27, %v412_v44  ;;  %v401_v39 = vmul.f32 %v1605_v17, %v1605_v17 }
  0x2f   :  { %v425_v8 = vmul.f32 %v1611_v37, %v1611_v37  ;;  %v461_v57 = vadd.f32 %v365_v34, %v353_v56  ;;  %v150_v11 = vadd.f32 %v149_v23, %v148_v20  ;;  %v174_v13 = vadd.f32 %v173_v32, %v172_v41 }
  0x30   :  { %v443_v14 = vadd.f32 %v442_v49, %v441_v46  ;;  %v454_v18 = vadd.f32 %v453_v28, %v452_v29  ;;  %v413_v0 = vmul.f32 %v1608_v26, %v1608_v26  ;;  %v186_v2 = vrot.slane %v185_v21, 2 }
  0x31   :  { %v462_v30 = vadd.f32 %v461_v57, %v377_v38  ;;  %v466_v54 = vsel %vm103_vm0, %v425_v8, 0.0  ;;  %v258_v44 = vmul.f32 0.020408163, %v150_v11  ;;  %v163_v43 = vadd.f32 %v162_v12, %v161_v19 }
  0x32   :  { %v444_v25 = vrot.slane %v443_v14, 2  ;;  %v455_v1 = vrot.slane %v454_v18, 4  ;;  %v175_v3 = vrot.slane %v174_v13, 1  ;;  %v1630_v4 = vadd.f32 %v186_v2, %v185_v21  ;;  %v1650_v21 = vld [vmem:[%s2728_s0 + $0x218] sm:$0xff] }
  0x33   :  { %v463_v7 = vadd.f32 %v462_v30, %v389_v51  ;;  %v1633_v23 = vsub.f32 %v1265_v42, %v258_v44  ;;  %v1636_v41 = vsub.f32 %v1279_v47, %v258_v44  ;;  %v1639_v32 = vsub.f32 %v1284_v48, %v258_v44 }
  0x34   :  { %v445_v28 = vadd.f32 %v444_v25, %v443_v14  ;;  %v456_v20 = vadd.f32 %v455_v1, %v454_v18  ;;  %v1642_v16 = vsub.f32 %v1297_v52, %v258_v44  ;;  %v1645_v19 = vsub.f32 %v1342_v10, %v258_v44 }
  0x35   :  { %2882 = vst [vmem:[#allocation50_spill] sm:$0xff] %v1639_v32  ;;  %v464_v42 = vadd.f32 %v463_v7, %v401_v39  ;;  %v1653_v47 = vsub.f32 %v1378_v58, %v258_v44  ;;  %v1656_v48 = vsub.f32 %v1302_v53, %v258_v44  ;;  %v354_v46 = vmul.f32 %v1633_v23, %v1633_v23 }
  0x36   :  { %2883 = vst [vmem:[#allocation51_spill] sm:$0xff] %v1642_v16  ;;  %2884 = vst [vmem:[#allocation52_spill] sm:$0xff] %v1645_v19  ;;  %v446_v52 = vrot.slane %v445_v28, 1  ;;  %v457_v27 = vrot.slane %v456_v20, 2  ;;  %v366_v10 = vmul.f32 %v1636_v41, %v1636_v41  ;;  %v378_v56 = vmul.f32 %v1639_v32, %v1639_v32 }
  0x37   :  { %2885 = vst [vmem:[#allocation53_spill] sm:$0xff] %v1653_v47  ;;  %2886 = vst [vmem:[#allocation54_spill] sm:$0xff] %v1656_v48  ;;  %v465_v34 = vadd.f32 %v464_v42, %v413_v0  ;;  %v390_v38 = vmul.f32 %v1642_v16, %v1642_v16  ;;  %v402_v58 = vmul.f32 %v1645_v19, %v1645_v19  ;;  %v259_v11 = vmul.f32 0.020408163, %v163_v43 }
  0x38   :  { %v1669_v53 = vadd.f32 %v193_v5, %v1650_v21  ;;  %v447_v51 = vadd.f32 %v446_v52, %v445_v28  ;;  %v458_v49 = vadd.f32 %v457_v27, %v456_v20  ;;  %v414_v29 = vmul.f32 %v1653_v47, %v1653_v47  ;;  %v2890_v28 = vld [vmem:[#allocation25_spill] sm:$0xff] }
  0x39   :  { %v474_v39 = vadd.f32 %v366_v10, %v354_v46  ;;  %v467_v8 = vadd.f32 %v466_v54, %v465_v34  ;;  %v426_v57 = vmul.f32 %v1656_v48, %v1656_v48  ;;  %v176_v12 = vadd.f32 %v175_v3, %v174_v13 }
  0x3a   :  { %v591_v14 = vmul.f32 0.020408163, %v447_v51  ;;  %v459_v18 = vrot.slane %v458_v49, 1  ;;  %v188_v2 = vrot.slane %v1630_v4, 1  ;;  %v1677_v5 = vsub.f32 %v1318_v59, %v259_v11  ;;  %v2892_v59 = vld [vmem:[#allocation13_spill] sm:$0xff] }
  0x3b   :  { %v475_v0 = vadd.f32 %v474_v39, %v378_v56  ;;  %v468_v30 = vrot.slane %v467_v8, 4  ;;  %v1680_v44 = vsub.f32 %v1323_v60, %v259_v11  ;;  %v1683_v25 = vsub.f32 %v1328_v61, %v259_v11 }
  0x3c   :  { %v603_v54 = vadd.f32 0.001, %v591_v14  ;;  %v460_v1 = vadd.f32 %v459_v18, %v458_v49  ;;  %v1686_v13 = vsub.f32 %v1348_v22, %v259_v11  ;;  %v1689_v3 = vsub.f32 %v1394_v62, %v259_v11 }
  0x3d   :  { %2887 = vst [vmem:[#allocation55_spill] sm:$0xff] %v1683_v25  ;;  %v476_v7 = vadd.f32 %v475_v0, %v390_v38  ;;  %v469_v43 = vadd.f32 %v468_v30, %v467_v8  ;;  %v1692_v20 = vsub.f32 %v2890_v28, %v259_v11  ;;  %v1695_v42 = vsub.f32 %v2892_v59, %v259_v11  ;;  %v2894_v0 = vld [vmem:[#allocation14_spill] sm:$0xff]  ;;  %v2898_v59 = vld [vmem:[#allocation21_spill] sm:$0xff] }
  0x3e   :  { %2888 = vst [vmem:[#allocation56_spill] sm:$0xff] %v1686_v13  ;;  %2889 = vst [vmem:[#allocation57_spill] sm:$0xff] %v1689_v3  ;;  %1071 = vrsqrt.f32 %v603_v54  ;;  %v592_v60 = vmul.f32 0.020408163, %v460_v1  ;;  %v355_v46 = vmul.f32 %v1677_v5, %v1677_v5  ;;  %v479_v22 = vsel %vm103_vm0, %v426_v57, 0.0 }
  0x3f   :  { %2891 = vst [vmem:[#allocation25_spill] sm:$0xff] %v1692_v20  ;;  %2893 = vst [vmem:[#allocation13_spill] sm:$0xff] %v1695_v42  ;;  %v477_v61 = vadd.f32 %v476_v7, %v402_v58  ;;  %v470_v52 = vrot.slane %v469_v43, 2  ;;  %v367_v27 = vmul.f32 %v1680_v44, %v1680_v44  ;;  %v379_v62 = vmul.f32 %v1683_v25, %v1683_v25  ;;  %v1711_v58 = vld [vmem:[%s2728_s0 + $0x278] sm:$0x1]  ;;  %v2895_v7 = vld [vmem:[#allocation15_spill] sm:$0xff] }
  0x40   :  { %v604_v10 = vadd.f32 0.001, %v592_v60  ;;  %v391_v34 = vmul.f32 %v1686_v13, %v1686_v13  ;;  %v403_v38 = vmul.f32 %v1689_v3, %v1689_v3  ;;  %v415_v49 = vmul.f32 %v1692_v20, %v1692_v20 }
  0x41   :  { %v478_v56 = vadd.f32 %v477_v61, %v414_v29  ;;  %v471_v51 = vadd.f32 %v470_v52, %v469_v43  ;;  %v487_v39 = vadd.f32 %v367_v27, %v355_v46  ;;  %v260_v8 = vmul.f32 0.020408163, %v176_v12  ;;  %v2896_v12 = vld [vmem:[#allocation17_spill] sm:$0xff]  ;;  %v2902_v52 = vld [vmem:[#allocation31_spill] sm:$0xff] }
  0x42   :  { %1073 = vrsqrt.f32 %v604_v10  ;;  %v427_v29 = vmul.f32 %v1695_v42, %v1695_v42  ;;  %v189_v11 = vadd.f32 %v188_v2, %v1630_v4  ;;  %v195_v54 = vsel %vm103_vm0, %v1711_v58, 0.0  ;;  %v2900_v2 = vld [vmem:[#allocation27_spill] sm:$0xff] }
  0x43   :  { %v480_v57 = vadd.f32 %v479_v22, %v478_v56  ;;  %v472_v14 = vrot.slane %v471_v51, 1  ;;  %v488_v18 = vadd.f32 %v487_v39, %v379_v62  ;;  %v1719_v30 = vsub.f32 %v2894_v0, %v260_v8  ;;  %v2904_v62 = vld [vmem:[#allocation19_spill] sm:$0xff] }
  0x44   :  { %v1724_v43 = vsub.f32 %v2895_v7, %v260_v8  ;;  %v1727_v28 = vsub.f32 %v2896_v12, %v260_v8  ;;  %v1730_v60 = vsub.f32 %v2898_v59, %v260_v8  ;;  %v1733_v46 = vsub.f32 %v2900_v2, %v260_v8  ;;  %v2906_v12 = vld [vmem:[#allocation2_spill] sm:$0xff]  ;;  %v2907_v59 = vld [vmem:[#allocation3_spill] sm:$0xff] }
  0x45   :  { %v481_v1 = vrot.slane %v480_v57, 4  ;;  %v473_v61 = vadd.f32 %v472_v14, %v471_v51  ;;  %v489_v4 = vadd.f32 %v488_v18, %v391_v34  ;;  %v1736_v22 = vsub.f32 %v2902_v52, %v260_v8 }
  0x46   :  { %2897 = vst [vmem:[#allocation14_spill] sm:$0xff] %v1727_v28  ;;  %2899 = vst [vmem:[#allocation15_spill] sm:$0xff] %v1730_v60  ;;  %v1739_v10 = vsub.f32 %v2904_v62, %v260_v8  ;;  %v356_v56 = vmul.f32 %v1719_v30, %v1719_v30  ;;  %v368_v39 = vmul.f32 %v1724_v43, %v1724_v43  ;;  %v492_v34 = vsel %vm103_vm0, %v427_v29, 0.0 }
  0x47   :  { %2901 = vst [vmem:[#allocation17_spill] sm:$0xff] %v1733_v46  ;;  %2903 = vst [vmem:[#allocation21_spill] sm:$0xff] %v1736_v22  ;;  %v482_v27 = vadd.f32 %v481_v1, %v480_v57  ;;  %v593_v0 = vmul.f32 0.020408163, %v473_v61  ;;  %v490_v7 = vadd.f32 %v489_v4, %v403_v38  ;;  %v380_v51 = vmul.f32 %v1727_v28, %v1727_v28 }
  0x48   :  { %2905 = vst [vmem:[#allocation27_spill] sm:$0xff] %v1739_v10  ;;  %v1072_v14 = vpop.eup %1071  ;;  %v392_v57 = vmul.f32 %v1730_v60, %v1730_v60  ;;  %v404_v8 = vmul.f32 %v1733_v46, %v1733_v46  ;;  %v428_v1 = vmul.f32 %v1739_v10, %v1739_v10  ;;  %v2908_v61 = vrot.slane %v2906_v12, %v2907_v59 }
  0x49   :  { %v483_v18 = vrot.slane %v482_v27, 2  ;;  %v605_v4 = vadd.f32 0.001, %v593_v0  ;;  %v491_v29 = vadd.f32 %v490_v7, %v415_v49  ;;  %v500_v2 = vadd.f32 %v368_v39, %v356_v56  ;;  %v2910_v49 = vld [vmem:[#allocation22_spill] sm:$0xff] }
  0x4a   :  { %v691_v38 = vmul.f32 %v1072_v14, %v2908_v61  ;;  %v416_v62 = vmul.f32 %v1736_v22, %v1736_v22  ;;  %v505_v42 = vsel %vm103_vm0, %v428_v1, 0.0  ;;  %v261_v48 = vmul.f32 0.020408163, %v189_v11  ;;  %v2911_v11 = vld [vmem:[#allocation4_spill] sm:$0xff]  ;;  %v2913_v1 = vld [vmem:[#allocation23_spill] sm:$0xff] }
  0x4b   :  { %v484_v52 = vadd.f32 %v483_v18, %v482_v27  ;;  %1075 = vrsqrt.f32 %v605_v4  ;;  %v493_v20 = vadd.f32 %v492_v34, %v491_v29  ;;  %v501_v10 = vadd.f32 %v500_v2, %v380_v51  ;;  %v2917_v4 = vld [vmem:[#allocation32_spill] sm:$0xff] }
  0x4c   :  { %v1761_v37 = vrot.slane %v691_v38, %v2907_v59  ;;  %v1074_v47 = vpop.eup %1073  ;;  %v1764_v14 = vsub.f32 %v2909_v33, %v261_v48  ;;  %v1767_v56 = vsub.f32 %v2910_v49, %v261_v48  ;;  %v196_v27 = vadd.f32 %v195_v54, %v1669_v53  ;;  %v2915_v33 = vld [vmem:[#allocation28_spill] sm:$0xff]  ;;  %v2919_v53 = vld [vmem:[#allocation7_spill] sm:$0xff] }
  0x4d   :  { %v485_v26 = vrot.slane %v484_v52, 1  ;;  %v2912_v0 = vrot.slane %v2906_v12, %v2911_v11  ;;  %v494_v18 = vrot.slane %v493_v20, 4  ;;  %v502_v34 = vadd.f32 %v501_v10, %v392_v57 }
  0x4e   :  { %v751_v39 = vmul.f32 %v1761_v37, %v1516_v45  ;;  %v1776_v61 = vsub.f32 %v2913_v1, %v261_v48  ;;  %v1779_v38 = vsub.f32 %v2915_v33, %v261_v48  ;;  %v1782_v29 = vsub.f32 %v2917_v4, %v261_v48 }
  0x4f   :  { %v692_v7 = vmul.f32 %v1074_v47, %v2912_v0  ;;  %v486_v51 = vadd.f32 %v485_v26, %v484_v52  ;;  %v495_v2 = vadd.f32 %v494_v18, %v493_v20  ;;  %v503_v49 = vadd.f32 %v502_v34, %v404_v8  ;;  %v2920_v0 = vld [vmem:[#allocation26_spill] sm:$0xff] }
  0x50   :  { %2914 = vst [vmem:[#allocation31_spill] sm:$0xff] %v1776_v61  ;;  %2916 = vst [vmem:[#allocation19_spill] sm:$0xff] %v1779_v38  ;;  %v899_v54 = vadd.f32 %v2919_v53, %v751_v39  ;;  %v1789_v10 = vsub.f32 %v2920_v0, %v261_v48  ;;  %v357_v26 = vmul.f32 %v1764_v14, %v1764_v14 }
  0x51   :  { %2918 = vst [vmem:[#allocation2_spill] sm:$0xff] %v1782_v29  ;;  %v1786_v45 = vrot.slane %v692_v7, %v2907_v59  ;;  %v594_v47 = vmul.f32 0.020408163, %v486_v51  ;;  %v369_v57 = vmul.f32 %v1767_v56, %v1767_v56  ;;  %v496_v39 = vrot.slane %v495_v2, 2 }
  0x52   :  { %2921 = vst [vmem:[#allocation3_spill] sm:$0xff] %v1789_v10  ;;  %983 = vst [vmem:[%s2731_s3] sm:$0xff] %v899_v54  ;;  %v504_v20 = vadd.f32 %v503_v49, %v416_v62  ;;  %v1801_v8 = vsub.f32 %v1497_v55, %v261_v48  ;;  %v381_v18 = vmul.f32 %v1776_v61, %v1776_v61  ;;  %v197_v49 = vrot.slane %v196_v27, 4 }
  0x53   :  { %v752_v52 = vmul.f32 %v1786_v45, %v1549_v63  ;;  %v606_v7 = vadd.f32 0.001, %v594_v47  ;;  %v393_v34 = vmul.f32 %v1779_v38, %v1779_v38  ;;  %v405_v51 = vmul.f32 %v1782_v29, %v1782_v29  ;;  %v2923_v63 = vld [vmem:[#allocation8_spill] sm:$0xff] }
  0x54   :  { %2922 = vst [vmem:[#allocation20_spill] sm:$0xff] %v1801_v8  ;;  %v497_v62 = vadd.f32 %v496_v39, %v495_v2  ;;  %v506_v33 = vadd.f32 %v505_v42, %v504_v20  ;;  %v429_v4 = vmul.f32 %v1789_v10, %v1789_v10  ;;  %v513_v54 = vadd.f32 %v369_v57, %v357_v26 }
  0x55   :  { %v900_v48 = vadd.f32 %v2923_v63, %v752_v52  ;;  %1077 = vrsqrt.f32 %v606_v7  ;;  %v661_v47 = vsub.s32 7, %v1137_v6  ;;  %v1076_v22 = vpop.eup %1075  ;;  %v417_v52 = vmul.f32 %v1801_v8, %v1801_v8  ;;  %v2924_v6 = vld [vmem:[#allocation5_spill] sm:$0xff] }
  0x56   :  { %v498_v2 = vrot.slane %v497_v62, 1  ;;  %v507_v42 = vrot.slane %v506_v33, 4  ;;  %v2925_v57 = vrot.slane %v2906_v12, %v2924_v6  ;;  %v514_v20 = vadd.f32 %v513_v54, %v381_v18 }
  0x57   :  { %v518_v7 = vsel %vm103_vm0, %v429_v4, 0.0  ;;  %v198_v10 = vadd.f32 %v197_v49, %v196_v27  ;;  %v1850_v3 = vrot.slane %v2906_v12, %v661_v47  ;;  %v1856_v27 = vld [vmem:[%s2729_s1 + $0x8] sm:$0xf]  ;;  %v1862_v49 = vrot.slane %v1152_v9, %v661_v47 }
  0x58   :  { %v693_v39 = vmul.f32 %v1076_v22, %v2925_v57  ;;  %v499_v29 = vadd.f32 %v498_v2, %v497_v62  ;;  %v508_v46 = vadd.f32 %v507_v42, %v506_v33  ;;  %v515_v4 = vadd.f32 %v514_v20, %v393_v34 }
  0x59   :  { %v1812_v1 = vld [vmem:[%s2728_s0 + $0x40] sm:$0xff]  ;;  %2926 = vst [vmem:[#allocation22_spill] sm:$0xff] %v1850_v3  ;;  %v199_v54 = vrot.slane %v198_v10, 2  ;;  %2927 = vst [vmem:[#allocation23_spill] sm:$0xff] %v1862_v49  ;;  %v2933_v61 = vrot.slane %v2906_v12, %v2932_v36 }
  0x5a   :  { %v1817_v55 = vld [vmem:[%s2728_s0 + $0xa0] sm:$0xff]  ;;  %v1859_v18 = vrot.slane %v693_v39, %v2907_v59  ;;  %v595_v34 = vmul.f32 0.020408163, %v499_v29  ;;  %v509_v42 = vrot.slane %v508_v46, 2  ;;  %v516_v39 = vadd.f32 %v515_v4, %v405_v51  ;;  %v2929_v51 = vld [vmem:[#allocation9_spill] sm:$0xff] }
  0x5b   :  { %v1826_v0 = vld [vmem:[%s2728_s0 + $0x100] sm:$0xff]  ;;  %v203_v26 = vadd.f32 %v1817_v55, %v1812_v1  ;;  %v200_v20 = vadd.f32 %v199_v54, %v198_v10 }
  0x5c   :  { %984 = vst [vmem:[%s2731_s3 + $0x8] sm:$0xff] %v900_v48  ;;  %v753_v57 = vmul.f32 %v1859_v18, %v1588_v40  ;;  %v607_v17 = vadd.f32 0.001, %v595_v34  ;;  %v510_v38 = vadd.f32 %v509_v42, %v508_v46  ;;  %v517_v54 = vadd.f32 %v516_v39, %v417_v52 }
  0x5d   :  { %v204_v22 = vadd.f32 %v203_v26, %v1826_v0  ;;  %v1885_v26 = vld [vmem:[%s2730_s2 + $0x8] sm:$0xf] }
  0x5e   :  { %2928 = vst [vmem:[#allocation28_spill] sm:$0xff] %v1885_v26  ;;  %v901_v4 = vadd.f32 %v2929_v51, %v753_v57  ;;  %v1912_v13 = vrot.slane %v1885_v26, %v2907_v59  ;;  %1079 = vrsqrt.f32 %v607_v17  ;;  %v511_v34 = vrot.slane %v510_v38, 1 }
  0x5f   :  { %v1078_v39 = vpop.eup %1077  ;;  %v519_v17 = vadd.f32 %v518_v7, %v517_v54 }
  0x60   :  { %2930 = vst [vmem:[#allocation32_spill] sm:$0xff] %v1912_v13  ;;  %v694_v49 = vmul.f32 %v1078_v39, %v2933_v61  ;;  %v512_v28 = vadd.f32 %v511_v34, %v510_v38  ;;  %v2935_v38 = vld [vmem:[#allocation29_spill] sm:$0xff]  ;;  %v2937_v34 = vld [vmem:[#allocation30_spill] sm:$0xff] }
  0x62   :  { %v1954_v32 = vrot.slane %v694_v49, %v2907_v59  ;;  %v596_v16 = vmul.f32 0.020408163, %v512_v28 }
  0x63   :  { %v1842_v48 = vld [vmem:[%s2728_s0 + $0x160] sm:$0xff]  ;;  %v1872_v33 = vld [vmem:[%s2728_s0 + $0x48] sm:$0xff]  ;;  %v1924_v52 = vld [vmem:[%s2728_s0 + $0x50] sm:$0xff] }
  0x64   :  { %v1847_v8 = vld [vmem:[%s2728_s0 + $0x280] sm:$0x1]  ;;  %v1877_v2 = vld [vmem:[%s2728_s0 + $0xa8] sm:$0xff]  ;;  %v205_v9 = vadd.f32 %v204_v22, %v1842_v48  ;;  %v201_v22 = vrot.slane %v200_v20, 1  ;;  %v1929_v57 = vld [vmem:[%s2728_s0 + $0xb0] sm:$0xff] }
  0x65   :  { %v1867_v62 = vld [vmem:[%s2728_s0 + $0x1c0] sm:$0xff]  ;;  %v208_v47 = vsel %vm103_vm0, %v1847_v8, 0.0  ;;  %v1899_v19 = vld [vmem:[%s2728_s0 + $0x108] sm:$0xff]  ;;  %v216_v10 = vadd.f32 %v1877_v2, %v1872_v33  ;;  %2931 = vst [vmem:[#allocation7_spill] sm:$0xff] %v1929_v57  ;;  %v229_v54 = vadd.f32 %v1929_v57, %v1924_v52  ;;  %v608_v39 = vadd.f32 0.001, %v596_v16 }
  0x66   :  { %v1892_v29 = vld [vmem:[%s2728_s0 + $0x220] sm:$0xff]  ;;  %v206_v60 = vadd.f32 %v205_v9, %v1867_v62  ;;  %v1905_v40 = vld [vmem:[%s2728_s0 + $0x288] sm:$0x1]  ;;  %v202_v13 = vadd.f32 %v201_v22, %v200_v20  ;;  %v520_v20 = vrot.slane %v519_v17, 4 }
  0x67   :  { %v1917_v46 = vld [vmem:[%s2728_s0 + $0x168] sm:$0xff]  ;;  %v217_v9 = vadd.f32 %v216_v10, %v1899_v19  ;;  %v221_v10 = vsel %vm103_vm0, %v1905_v40, 0.0  ;;  %1081 = vrsqrt.f32 %v608_v39 }
  0x68   :  { %v207_v42 = vadd.f32 %v206_v60, %v1892_v29  ;;  %985 = vst [vmem:[%s2731_s3 + $0x10] sm:$0xff] %v901_v4  ;;  %v262_v22 = vmul.f32 0.020408163, %v202_v13  ;;  %v1949_v4 = vrot.slane %v1885_v26, %v2911_v11  ;;  %v521_v61 = vadd.f32 %v520_v20, %v519_v17  ;;  %v1080_v39 = vpop.eup %1079 }
  0x69   :  { %v218_v7 = vadd.f32 %v217_v9, %v1917_v46  ;;  %v754_v9 = vmul.f32 %v1954_v32, %v1633_v23 }
  0x6a   :  { %v209_v25 = vadd.f32 %v208_v47, %v207_v42  ;;  %2934 = vst [vmem:[#allocation26_spill] sm:$0xff] %v1949_v4  ;;  %v1958_v47 = vsub.f32 %v2935_v38, %v262_v22  ;;  %v1961_v13 = vsub.f32 %v2937_v34, %v262_v22  ;;  %v1964_v42 = vsub.f32 %v1489_v31, %v262_v22 }
  0x6b   :  { %v1969_v49 = vsub.f32 %v1503_v50, %v262_v22  ;;  %v1972_v28 = vsub.f32 %v1596_v24, %v262_v22  ;;  %v1980_v20 = vsub.f32 %v1650_v21, %v262_v22  ;;  %v1983_v31 = vsub.f32 %v1711_v58, %v262_v22  ;;  %v2945_v24 = vld [vmem:[#allocation10_spill] sm:$0xff] }
  0x6c   :  { %v210_v3 = vrot.slane %v209_v25, 4  ;;  %2936 = vst [vmem:[#allocation8_spill] sm:$0xff] %v1958_v47  ;;  %2938 = vst [vmem:[#allocation9_spill] sm:$0xff] %v1961_v13  ;;  %v358_v23 = vmul.f32 %v1958_v47, %v1958_v47  ;;  %v902_v16 = vadd.f32 %v2945_v24, %v754_v9  ;;  %v370_v38 = vmul.f32 %v1961_v13, %v1961_v13 }
  0x6d   :  { %2939 = vst [vmem:[#allocation29_spill] sm:$0xff] %v1964_v42  ;;  %2940 = vst [vmem:[#allocation30_spill] sm:$0xff] %v1969_v49  ;;  %v382_v21 = vmul.f32 %v1964_v42, %v1964_v42  ;;  %v394_v34 = vmul.f32 %v1969_v49, %v1969_v49  ;;  %v406_v4 = vmul.f32 %v1972_v28, %v1972_v28 }
  0x6e   :  { %2941 = vst [vmem:[#allocation58_spill] sm:$0xff] %v1972_v28  ;;  %2943 = vst [vmem:[#allocation60_spill] sm:$0xff] %v1980_v20  ;;  %v430_v11 = vmul.f32 %v1983_v31, %v1983_v31  ;;  %v526_v42 = vadd.f32 %v370_v38, %v358_v23  ;;  %v211_v13 = vadd.f32 %v210_v3, %v209_v25  ;;  %v2948_v28 = vld [vmem:[#allocation11_spill] sm:$0xff] }
  0x6f   :  { %v1937_v60 = vld [vmem:[%s2728_s0 + $0x1c8] sm:$0xff]  ;;  %v1977_v17 = vld [vmem:[%s2728_s0 + $0x290] sm:$0x1]  ;;  %2944 = vst [vmem:[#allocation61_spill] sm:$0xff] %v1983_v31  ;;  %v695_v49 = vmul.f32 %v1080_v39, %v2948_v28 }
  0x70   :  { %v219_v12 = vadd.f32 %v218_v7, %v1937_v60  ;;  %2942 = vst [vmem:[#allocation59_spill] sm:$0xff] %v1977_v17  ;;  %v522_v7 = vrot.slane %v521_v61, 2  ;;  %v1990_v50 = vld [vmem:[%s2728_s0 + $0x228] sm:$0xff]  ;;  %v2000_v58 = vld [vmem:[%s2728_s0 + $0x110] sm:$0xff]  ;;  %v234_v9 = vsel %vm103_vm0, %v1977_v17, 0.0  ;;  %v418_v17 = vmul.f32 %v1980_v20, %v1980_v20 }
  0x71   :  { %2946 = vst [vmem:[#allocation10_spill] sm:$0xff] %v2000_v58  ;;  %986 = vst [vmem:[%s2731_s3 + $0x18] sm:$0xff] %v902_v16  ;;  %v230_v16 = vadd.f32 %v229_v54, %v2000_v58  ;;  %v527_v3 = vadd.f32 %v526_v42, %v382_v21  ;;  %v2041_v39 = vrot.slane %v695_v49, %v2907_v59  ;;  %v531_v20 = vsel %vm103_vm0, %v430_v11, 0.0 }
  0x72   :  { %v523_v22 = vadd.f32 %v522_v7, %v521_v61  ;;  %v220_v61 = vadd.f32 %v219_v12, %v1990_v50  ;;  %v212_v12 = vrot.slane %v211_v13, 2 }
  0x73   :  { %v528_v42 = vadd.f32 %v527_v3, %v394_v34  ;;  %v755_v49 = vmul.f32 %v2041_v39, %v1677_v5  ;;  %v2067_v34 = vrot.slane %v1885_v26, %v2924_v6 }
  0x74   :  { %v524_v47 = vrot.slane %v523_v22, 1  ;;  %v222_v38 = vadd.f32 %v221_v10, %v220_v61  ;;  %v213_v21 = vadd.f32 %v212_v12, %v211_v13 }
  0x75   :  { %2953 = vst [vmem:[#allocation66_spill] sm:$0xff] %v2067_v34  ;;  %v529_v3 = vadd.f32 %v528_v42, %v406_v4  ;;  %v1082_v34 = vpop.eup %1081 }
  0x76   :  { %v525_v31 = vadd.f32 %v524_v47, %v523_v22  ;;  %v223_v61 = vrot.slane %v222_v38, 4  ;;  %v214_v12 = vrot.slane %v213_v21, 1 }
  0x77   :  { %v530_v6 = vadd.f32 %v529_v3, %v418_v17  ;;  %v2956_v3 = vld [vmem:[#allocation34_spill] sm:$0xff] }
  0x78   :  { %v2017_v7 = vld [vmem:[%s2728_s0 + $0x170] sm:$0xff]  ;;  %v2026_v23 = vld [vmem:[%s2728_s0 + $0x58] sm:$0xff]  ;;  %v597_v22 = vmul.f32 0.020408163, %v525_v31  ;;  %v215_v4 = vadd.f32 %v214_v12, %v213_v21  ;;  %v763_v12 = vmul.f32 %v1761_v37, %v2956_v3 }
  0x79   :  { %2947 = vst [vmem:[#allocation62_spill] sm:$0xff] %v2017_v7  ;;  %2949 = vst [vmem:[#allocation11_spill] sm:$0xff] %v2026_v23  ;;  %v2031_v25 = vld [vmem:[%s2728_s0 + $0xb8] sm:$0xff]  ;;  %v2036_v28 = vld [vmem:[%s2728_s0 + $0x1d0] sm:$0xff]  ;;  %v231_v58 = vadd.f32 %v230_v16, %v2017_v7  ;;  %v224_v7 = vadd.f32 %v223_v61, %v222_v38 }
  0x7a   :  { %2950 = vst [vmem:[#allocation63_spill] sm:$0xff] %v2031_v25  ;;  %v2048_v10 = vld [vmem:[%s2728_s0 + $0x118] sm:$0xff]  ;;  %v2053_v54 = vld [vmem:[%s2728_s0 + $0x230] sm:$0xff]  ;;  %v242_v11 = vadd.f32 %v2031_v25, %v2026_v23  ;;  %v609_v5 = vadd.f32 0.001, %v597_v22  ;;  %v911_v22 = vadd.f32 %v2919_v53, %v763_v12 }
  0x7b   :  { %2951 = vst [vmem:[#allocation64_spill] sm:$0xff] %v2048_v10  ;;  %v2058_v47 = vld [vmem:[%s2728_s0 + $0x298] sm:$0x1]  ;;  %v232_v13 = vadd.f32 %v231_v58, %v2036_v28  ;;  %v2954_v23 = vld [vmem:[#allocation12_spill] sm:$0xff]  ;;  %v225_v42 = vrot.slane %v224_v7, 2 }
  0x7c   :  { %2952 = vst [vmem:[#allocation65_spill] sm:$0xff] %v2058_v47  ;;  %v2072_v16 = vld [vmem:[%s2728_s0 + $0x178] sm:$0xff]  ;;  %v243_v25 = vadd.f32 %v242_v11, %v2048_v10  ;;  %v903_v57 = vadd.f32 %v2954_v23, %v755_v49  ;;  %v247_v26 = vsel %vm103_vm0, %v2058_v47, 0.0  ;;  %v2955_v61 = vld [vmem:[#allocation16_spill] sm:$0xff]  ;;  %1083 = vrsqrt.f32 %v609_v5 }
  0x7d   :  { %v233_v31 = vadd.f32 %v232_v13, %v2053_v54  ;;  %v2080_v58 = vld [vmem:[%s2728_s0 + $0x1d8] sm:$0xff]  ;;  %v696_v11 = vmul.f32 %v1082_v34, %v2955_v61  ;;  %v532_v13 = vadd.f32 %v531_v20, %v530_v6  ;;  %v263_v10 = vmul.f32 0.020408163, %v215_v4 }
  0x7e   :  { %v244_v38 = vadd.f32 %v243_v25, %v2072_v16  ;;  %987 = vst [vmem:[%s2731_s3 + $0x20] sm:$0xff] %v903_v57  ;;  %v226_v47 = vadd.f32 %v225_v42, %v224_v7  ;;  %v2957_v57 = vld [vmem:[#allocation40_spill] sm:$0xff] }
  0x7f   :  { %v235_v49 = vadd.f32 %v234_v9, %v233_v31  ;;  %v2093_v21 = vrot.slane %v696_v11, %v2907_v59  ;;  %v764_v34 = vmul.f32 %v1786_v45, %v2957_v57  ;;  %v533_v5 = vrot.slane %v532_v13, 4 }
  0x80   :  { %v245_v17 = vadd.f32 %v244_v38, %v2080_v58  ;;  %v2100_v9 = vsub.f32 %v1812_v1, %v263_v10  ;;  %v2103_v6 = vsub.f32 %v1817_v55, %v263_v10  ;;  %v2106_v20 = vsub.f32 %v1826_v0, %v263_v10 }
  0x81   :  { %v236_v25 = vrot.slane %v235_v49, 4  ;;  %v756_v7 = vmul.f32 %v2093_v21, %v1719_v30  ;;  %v2111_v31 = vsub.f32 %v1842_v48, %v263_v10  ;;  %v2114_v4 = vsub.f32 %v1867_v62, %v263_v10  ;;  %v2964_v48 = vld [vmem:[#allocation18_spill] sm:$0xff] }
  0x82   :  { %2958 = vst [vmem:[#allocation12_spill] sm:$0xff] %v2103_v6  ;;  %2959 = vst [vmem:[#allocation16_spill] sm:$0xff] %v2106_v20  ;;  %v2117_v42 = vsub.f32 %v1892_v29, %v263_v10  ;;  %v534_v1 = vadd.f32 %v533_v5, %v532_v13  ;;  %v2120_v38 = vsub.f32 %v1847_v8, %v263_v10  ;;  %v227_v57 = vrot.slane %v226_v47, 1 }
  0x83   :  { %2960 = vst [vmem:[#allocation34_spill] sm:$0xff] %v2111_v31  ;;  %2961 = vst [vmem:[#allocation40_spill] sm:$0xff] %v2114_v4  ;;  %v359_v55 = vmul.f32 %v2100_v9, %v2100_v9  ;;  %v371_v0 = vmul.f32 %v2103_v6, %v2103_v6  ;;  %v904_v62 = vadd.f32 %v2964_v48, %v756_v7 }
  0x84   :  { %2962 = vst [vmem:[#allocation67_spill] sm:$0xff] %v2117_v42  ;;  %2963 = vst [vmem:[#allocation68_spill] sm:$0xff] %v2120_v38  ;;  %v383_v29 = vmul.f32 %v2106_v20, %v2106_v20  ;;  %v395_v8 = vmul.f32 %v2111_v31, %v2111_v31  ;;  %v407_v10 = vmul.f32 %v2114_v4, %v2114_v4  ;;  %v535_v61 = vrot.slane %v534_v1, 2 }
  0x85   :  { %v2129_v30 = vld [vmem:[%s2728_s0 + $0x238] sm:$0xff]  ;;  %v419_v11 = vmul.f32 %v2117_v42, %v2117_v42  ;;  %v431_v13 = vmul.f32 %v2120_v38, %v2120_v38  ;;  %v539_v3 = vadd.f32 %v371_v0, %v359_v55  ;;  %v237_v5 = vadd.f32 %v236_v25, %v235_v49 }
  0x86   :  { %988 = vst [vmem:[%s2731_s3 + $0x28] sm:$0xff] %v904_v62  ;;  %v246_v7 = vadd.f32 %v245_v17, %v2129_v30  ;;  %v536_v36 = vadd.f32 %v535_v61, %v534_v1  ;;  %v912_v42 = vadd.f32 %v2923_v63, %v764_v34  ;;  %v1084_v20 = vpop.eup %1083  ;;  %v228_v6 = vadd.f32 %v227_v57, %v226_v47  ;;  %v2965_v17 = vld [vmem:[#allocation24_spill] sm:$0xff] }
  0x87   :  { %v540_v4 = vadd.f32 %v539_v3, %v383_v29  ;;  %v544_v31 = vsel %vm103_vm0, %v431_v13, 0.0  ;;  %v238_v38 = vrot.slane %v237_v5, 2  ;;  %995 = vst [vmem:[%s2731_s3 + $0x60] sm:$0xff] %v911_v22  ;;  %v765_v49 = vmul.f32 %v1859_v18, %v1591_v35 }
  0x88   :  { %v248_v55 = vadd.f32 %v247_v26, %v246_v7  ;;  %v697_v25 = vmul.f32 %v1084_v20, %v2965_v17  ;;  %v537_v12 = vrot.slane %v536_v36, 1  ;;  %996 = vst [vmem:[%s2731_s3 + $0x68] sm:$0xff] %v912_v42  ;;  %v766_v47 = vmul.f32 %v1954_v32, %v1636_v41 }
  0x89   :  { %v541_v1 = vadd.f32 %v540_v4, %v395_v8  ;;  %v264_v34 = vmul.f32 0.020408163, %v228_v6  ;;  %v239_v26 = vadd.f32 %v238_v38, %v237_v5  ;;  %v913_v62 = vadd.f32 %v2929_v51, %v765_v49 }
  0x8a   :  { %v249_v0 = vrot.slane %v248_v55, 4  ;;  %v2162_v22 = vrot.slane %v697_v25, %v2907_v59  ;;  %v538_v35 = vadd.f32 %v537_v12, %v536_v36  ;;  %v914_v20 = vadd.f32 %v2945_v24, %v766_v47 }
  0x8b   :  { %v542_v29 = vadd.f32 %v541_v1, %v407_v10  ;;  %v2166_v4 = vsub.f32 %v1872_v33, %v264_v34  ;;  %v2169_v42 = vsub.f32 %v1877_v2, %v264_v34  ;;  %v2172_v41 = vsub.f32 %v1899_v19, %v264_v34  ;;  %997 = vst [vmem:[%s2731_s3 + $0x70] sm:$0xff] %v913_v62  ;;  %v2966_v10 = vld [vmem:[#allocation33_spill] sm:$0xff] }
  0x8c   :  { %v2175_v6 = vsub.f32 %v1917_v46, %v264_v34  ;;  %v757_v36 = vmul.f32 %v2162_v22, %v1764_v14  ;;  %v598_v38 = vmul.f32 0.020408163, %v538_v35  ;;  %v2183_v33 = vsub.f32 %v1937_v60, %v264_v34  ;;  %998 = vst [vmem:[%s2731_s3 + $0x78] sm:$0xff] %v914_v20 }
  0x8d   :  { %v543_v8 = vadd.f32 %v542_v29, %v419_v11  ;;  %v2189_v19 = vsub.f32 %v1990_v50, %v264_v34  ;;  %v2192_v2 = vsub.f32 %v1905_v40, %v264_v34  ;;  %v360_v46 = vmul.f32 %v2166_v4, %v2166_v4 }
  0x8e   :  { %v372_v14 = vmul.f32 %v2169_v42, %v2169_v42  ;;  %v905_v61 = vadd.f32 %v2966_v10, %v757_v36  ;;  %v610_v60 = vadd.f32 0.001, %v598_v38  ;;  %v384_v13 = vmul.f32 %v2172_v41, %v2172_v41  ;;  %v2967_v36 = vld [vmem:[#allocation35_spill] sm:$0xff] }
  0x8f   :  { %v545_v11 = vadd.f32 %v544_v31, %v543_v8  ;;  %v396_v50 = vmul.f32 %v2175_v6, %v2175_v6  ;;  %v408_v40 = vmul.f32 %v2183_v33, %v2183_v33  ;;  %v420_v3 = vmul.f32 %v2189_v19, %v2189_v19 }
  0x90   :  { %v432_v57 = vmul.f32 %v2192_v2, %v2192_v2  ;;  %989 = vst [vmem:[%s2731_s3 + $0x30] sm:$0xff] %v905_v61  ;;  %1085 = vrsqrt.f32 %v610_v60  ;;  %v552_v5 = vadd.f32 %v372_v14, %v360_v46  ;;  %v240_v7 = vrot.slane %v239_v26, 1 }
  0x91   :  { %v546_v31 = vrot.slane %v545_v11, 4  ;;  %v250_v17 = vadd.f32 %v249_v0, %v248_v55  ;;  %v767_v25 = vmul.f32 %v2041_v39, %v1680_v44  ;;  %v768_v12 = vmul.f32 %v2093_v21, %v1724_v43 }
  0x92   :  { %v557_v49 = vsel %vm103_vm0, %v432_v57, 0.0  ;;  %v553_v47 = vadd.f32 %v552_v5, %v384_v13  ;;  %v241_v34 = vadd.f32 %v240_v7, %v239_v26  ;;  %v769_v62 = vmul.f32 %v2162_v22, %v1767_v56  ;;  %v2968_v26 = vld [vmem:[#allocation41_spill] sm:$0xff]  ;;  %v2969_v13 = vld [vmem:[#allocation7_spill] sm:$0xff]  ;;  %v2970_v57 = vld [vmem:[#allocation10_spill] sm:$0xff] }
  0x93   :  { %v547_v1 = vadd.f32 %v546_v31, %v545_v11  ;;  %v251_v35 = vrot.slane %v250_v17, 2  ;;  %v915_v29 = vadd.f32 %v2954_v23, %v767_v25  ;;  %v916_v20 = vadd.f32 %v2964_v48, %v768_v12  ;;  %v2971_v5 = vld [vmem:[#allocation62_spill] sm:$0xff]  ;;  %v2972_v25 = vld [vmem:[#allocation59_spill] sm:$0xff] }
  0x94   :  { %v775_v55 = vmul.f32 %v1761_v37, %v2967_v36  ;;  %v554_v38 = vadd.f32 %v553_v47, %v396_v50  ;;  %v265_v44 = vmul.f32 0.020408163, %v241_v34  ;;  %v917_v8 = vadd.f32 %v2966_v10, %v769_v62  ;;  %v2973_v36 = vld [vmem:[#allocation22_spill] sm:$0xff] }
  0x95   :  { %v548_v0 = vrot.slane %v547_v1, 2  ;;  %v252_v43 = vadd.f32 %v251_v35, %v250_v17  ;;  %999 = vst [vmem:[%s2731_s3 + $0x80] sm:$0xff] %v915_v29  ;;  %1000 = vst [vmem:[%s2731_s3 + $0x88] sm:$0xff] %v916_v20  ;;  %v776_v46 = vmul.f32 %v1786_v45, %v2968_v26  ;;  %v777_v14 = vmul.f32 %v1859_v18, %v1599_v15 }
  0x96   :  { %v923_v56 = vadd.f32 %v2919_v53, %v775_v55  ;;  %v555_v60 = vadd.f32 %v554_v38, %v408_v40  ;;  %v2236_v11 = vsub.f32 %v1924_v52, %v265_v44  ;;  %v2239_v50 = vsub.f32 %v2969_v13, %v265_v44  ;;  %1001 = vst [vmem:[%s2731_s3 + $0x90] sm:$0xff] %v917_v8 }
  0x97   :  { %v549_v61 = vadd.f32 %v548_v0, %v547_v1  ;;  %v2245_v31 = vsub.f32 %v2970_v57, %v265_v44  ;;  %v2248_v7 = vsub.f32 %v2971_v5, %v265_v44  ;;  %v2251_v15 = vsub.f32 %v2036_v28, %v265_v44  ;;  %v2974_v57 = vld [vmem:[#allocation50_spill] sm:$0xff] }
  0x98   :  { %v2254_v40 = vsub.f32 %v2053_v54, %v265_v44  ;;  %1007 = vst [vmem:[%s2731_s3 + $0xc0] sm:$0xff] %v923_v56  ;;  %v556_v17 = vadd.f32 %v555_v60, %v420_v3  ;;  %v2260_v12 = vsub.f32 %v2972_v25, %v265_v44  ;;  %v361_v1 = vmul.f32 %v2236_v11, %v2236_v11  ;;  %v2976_v25 = vld [vmem:[#allocation14_spill] sm:$0xff] }
  0x99   :  { %v550_v52 = vrot.slane %v549_v61, 1  ;;  %v373_v47 = vmul.f32 %v2239_v50, %v2239_v50  ;;  %v385_v28 = vmul.f32 %v2245_v31, %v2245_v31  ;;  %v397_v54 = vmul.f32 %v2248_v7, %v2248_v7 }
  0x9a   :  { %v409_v34 = vmul.f32 %v2251_v15, %v2251_v15  ;;  %v1086_v62 = vpop.eup %1085  ;;  %v558_v35 = vadd.f32 %v557_v49, %v556_v17  ;;  %v421_v29 = vmul.f32 %v2254_v40, %v2254_v40  ;;  %v433_v20 = vmul.f32 %v2260_v12, %v2260_v12  ;;  %v2975_v17 = vld [vmem:[#allocation55_spill] sm:$0xff] }
  0x9b   :  { %v551_v3 = vadd.f32 %v550_v52, %v549_v61  ;;  %v698_v55 = vmul.f32 %v1086_v62, %v2973_v36  ;;  %v565_v0 = vadd.f32 %v373_v47, %v361_v1  ;;  %v253_v38 = vrot.slane %v252_v43, 1 }
  0x9c   :  { %v924_v44 = vadd.f32 %v2923_v63, %v776_v46  ;;  %v559_v56 = vrot.slane %v558_v35, 4  ;;  %v570_v26 = vsel %vm103_vm0, %v433_v20, 0.0  ;;  %v925_v60 = vadd.f32 %v2929_v51, %v777_v14 }
  0x9d   :  { %v599_v8 = vmul.f32 0.020408163, %v551_v3  ;;  %v2281_v49 = vrot.slane %v698_v55, %v2907_v59  ;;  %v566_v61 = vadd.f32 %v565_v0, %v385_v28  ;;  %v254_v13 = vadd.f32 %v253_v38, %v252_v43  ;;  %v2977_v43 = vld [vmem:[#allocation8_spill] sm:$0xff]  ;;  %v2978_v3 = vld [vmem:[#allocation9_spill] sm:$0xff]  ;;  %v2979_v0 = vld [vmem:[#allocation23_spill] sm:$0xff] }
  0x9e   :  { %1008 = vst [vmem:[%s2731_s3 + $0xc8] sm:$0xff] %v924_v44  ;;  %v778_v5 = vmul.f32 %v1954_v32, %v2974_v57  ;;  %v560_v46 = vadd.f32 %v559_v56, %v558_v35  ;;  %1009 = vst [vmem:[%s2731_s3 + $0xd0] sm:$0xff] %v925_v60  ;;  %v779_v14 = vmul.f32 %v2041_v39, %v2975_v17  ;;  %v2981_v60 = vld [vmem:[#allocation63_spill] sm:$0xff] }
  0x9f   :  { %v611_v52 = vadd.f32 0.001, %v599_v8  ;;  %v780_v1 = vmul.f32 %v2093_v21, %v2976_v25  ;;  %v758_v47 = vmul.f32 %v2281_v49, %v2977_v43  ;;  %v567_v28 = vadd.f32 %v566_v61, %v397_v54  ;;  %v2980_v8 = vld [vmem:[#allocation11_spill] sm:$0xff]  ;;  %v2982_v61 = vld [vmem:[#allocation64_spill] sm:$0xff] }
  0xa0   :  { %v266_v62 = vmul.f32 0.020408163, %v254_v13  ;;  %v770_v20 = vmul.f32 %v2281_v49, %v2978_v3  ;;  %v561_v35 = vrot.slane %v560_v46, 2  ;;  %v926_v36 = vadd.f32 %v2945_v24, %v778_v5 }
  0xa1   :  { %1087 = vrsqrt.f32 %v611_v52  ;;  %v927_v55 = vadd.f32 %v2954_v23, %v779_v14  ;;  %v906_v38 = vadd.f32 %v2979_v0, %v758_v47  ;;  %v568_v44 = vadd.f32 %v567_v28, %v409_v34 }
  0xa2   :  { %v2303_v56 = vsub.f32 %v2980_v8, %v266_v62  ;;  %v2306_v57 = vsub.f32 %v2981_v60, %v266_v62  ;;  %v562_v54 = vadd.f32 %v561_v35, %v560_v46  ;;  %v2309_v13 = vsub.f32 %v2982_v61, %v266_v62  ;;  %1010 = vst [vmem:[%s2731_s3 + $0xd8] sm:$0xff] %v926_v36  ;;  %v2985_v8 = vld [vmem:[#allocation31_spill] sm:$0xff]  ;;  %v2986_v60 = vld [vmem:[#allocation29_spill] sm:$0xff] }
  0xa3   :  { %v2312_v52 = vsub.f32 %v2072_v16, %v266_v62  ;;  %v2315_v5 = vsub.f32 %v2080_v58, %v266_v62  ;;  %1011 = vst [vmem:[%s2731_s3 + $0xe0] sm:$0xff] %v927_v55  ;;  %990 = vst [vmem:[%s2731_s3 + $0x38] sm:$0xff] %v906_v38  ;;  %v569_v34 = vadd.f32 %v568_v44, %v421_v29  ;;  %v2983_v16 = vld [vmem:[#allocation65_spill] sm:$0xff] }
  0xa4   :  { %v2327_v46 = vsub.f32 %v2129_v30, %v266_v62  ;;  %v2330_v17 = vsub.f32 %v2983_v16, %v266_v62  ;;  %v362_v58 = vmul.f32 %v2303_v56, %v2303_v56  ;;  %v563_v14 = vrot.slane %v562_v54, 1 }
  0xa5   :  { %v374_v25 = vmul.f32 %v2306_v57, %v2306_v57  ;;  %v386_v43 = vmul.f32 %v2309_v13, %v2309_v13  ;;  %v398_v47 = vmul.f32 %v2312_v52, %v2312_v52  ;;  %v571_v29 = vadd.f32 %v570_v26, %v569_v34 }
  0xa6   :  { %2984 = vst [vmem:[#allocation18_spill] sm:$0xff] %v2330_v17  ;;  %v410_v30 = vmul.f32 %v2315_v5, %v2315_v5  ;;  %v422_v28 = vmul.f32 %v2327_v46, %v2327_v46  ;;  %v434_v62 = vmul.f32 %v2330_v17, %v2330_v17  ;;  %v564_v3 = vadd.f32 %v563_v14, %v562_v54  ;;  %v2988_v54 = vld [vmem:[#allocation42_spill] sm:$0xff] }
  0xa7   :  { %v578_v35 = vadd.f32 %v374_v25, %v362_v58  ;;  %v918_v36 = vadd.f32 %v2979_v0, %v770_v20  ;;  %v928_v55 = vadd.f32 %v2964_v48, %v780_v1  ;;  %v572_v38 = vrot.slane %v571_v29, 4  ;;  %v2987_v1 = vld [vmem:[#allocation36_spill] sm:$0xff] }
  0xa8   :  { %v583_v44 = vsel %vm103_vm0, %v434_v62, 0.0  ;;  %v781_v26 = vmul.f32 %v2162_v22, %v2985_v8  ;;  %v782_v61 = vmul.f32 %v2281_v49, %v2986_v60  ;;  %v600_v34 = vmul.f32 0.020408163, %v564_v3 }
  0xa9   :  { %v579_v16 = vadd.f32 %v578_v35, %v386_v43  ;;  %1002 = vst [vmem:[%s2731_s3 + $0x98] sm:$0xff] %v918_v36  ;;  %1012 = vst [vmem:[%s2731_s3 + $0xe8] sm:$0xff] %v928_v55  ;;  %v787_v20 = vmul.f32 %v1761_v37, %v2987_v1  ;;  %v788_v58 = vmul.f32 %v1786_v45, %v2988_v54  ;;  %v2989_v43 = vld [vmem:[#allocation46_spill] sm:$0xff] }
  0xaa   :  { %v573_v14 = vadd.f32 %v572_v38, %v571_v29  ;;  %v929_v25 = vadd.f32 %v2966_v10, %v781_v26  ;;  %v930_v62 = vadd.f32 %v2979_v0, %v782_v61  ;;  %v789_v3 = vmul.f32 %v1859_v18, %v2989_v43  ;;  %v2992_v61 = vld [vmem:[#allocation56_spill] sm:$0xff] }
  0xab   :  { %v1088_v35 = vpop.eup %1087  ;;  %v612_v36 = vadd.f32 0.001, %v600_v34  ;;  %v580_v8 = vadd.f32 %v579_v16, %v398_v47  ;;  %v935_v60 = vadd.f32 %v2919_v53, %v787_v20  ;;  %v936_v55 = vadd.f32 %v2923_v63, %v788_v58  ;;  %v2991_v47 = vld [vmem:[#allocation51_spill] sm:$0xff] }
  0xac   :  { %v2990_v1 = vrot.slane %v1856_v27, %v2907_v59  ;;  %v574_v54 = vrot.slane %v573_v14, 2  ;;  %1013 = vst [vmem:[%s2731_s3 + $0xf0] sm:$0xff] %v929_v25  ;;  %1014 = vst [vmem:[%s2731_s3 + $0xf8] sm:$0xff] %v930_v62  ;;  %v937_v29 = vadd.f32 %v2929_v51, %v789_v3  ;;  %v790_v38 = vmul.f32 %v1954_v32, %v2991_v47  ;;  %v2993_v16 = vld [vmem:[#allocation15_spill] sm:$0xff] }
  0xad   :  { %1089 = vrsqrt.f32 %v612_v36  ;;  %v581_v26 = vadd.f32 %v580_v8, %v410_v30  ;;  %1019 = vst [vmem:[%s2731_s3 + $0x120] sm:$0xff] %v935_v60  ;;  %1020 = vst [vmem:[%s2731_s3 + $0x128] sm:$0xff] %v936_v55  ;;  %v791_v34 = vmul.f32 %v2041_v39, %v2992_v61  ;;  %v792_v20 = vmul.f32 %v2093_v21, %v2993_v16  ;;  %v2994_v62 = vld [vmem:[#allocation19_spill] sm:$0xff]  ;;  %v2995_v8 = vld [vmem:[#allocation30_spill] sm:$0xff] }
  0xae   :  { %v699_v17 = vmul.f32 %v1088_v35, %v2990_v1  ;;  %v575_v25 = vadd.f32 %v574_v54, %v573_v14  ;;  %1021 = vst [vmem:[%s2731_s3 + $0x130] sm:$0xff] %v937_v29  ;;  %v938_v30 = vadd.f32 %v2945_v24, %v790_v38  ;;  %v793_v43 = vmul.f32 %v2162_v22, %v2994_v62  ;;  %v2996_v55 = vld [vmem:[#allocation12_spill] sm:$0xff]  ;;  %v2998_v38 = vld [vmem:[#allocation34_spill] sm:$0xff] }
  0xaf   :  { %v582_v3 = vadd.f32 %v581_v26, %v422_v28  ;;  %v939_v35 = vadd.f32 %v2954_v23, %v791_v34  ;;  %v940_v36 = vadd.f32 %v2964_v48, %v792_v20  ;;  %v794_v60 = vmul.f32 %v2281_v49, %v2995_v8  ;;  %v2997_v54 = vld [vmem:[#allocation16_spill] sm:$0xff]  ;;  %v3002_v8 = vld [vmem:[#allocation47_spill] sm:$0xff] }
  0xb0   :  { %v2392_v58 = vrot.slane %v699_v17, %v2907_v59  ;;  %v576_v14 = vrot.slane %v575_v25, 1  ;;  %1022 = vst [vmem:[%s2731_s3 + $0x138] sm:$0xff] %v938_v30  ;;  %v2999_v61 = vld [vmem:[#allocation32_spill] sm:$0xff] }
  0xb1   :  { %v584_v28 = vadd.f32 %v583_v44, %v582_v3  ;;  %1023 = vst [vmem:[%s2731_s3 + $0x140] sm:$0xff] %v939_v35  ;;  %1024 = vst [vmem:[%s2731_s3 + $0x148] sm:$0xff] %v940_v36  ;;  %v942_v47 = vadd.f32 %v2979_v0, %v794_v60  ;;  %v3001_v35 = vld [vmem:[#allocation43_spill] sm:$0xff]  ;;  %v801_v60 = vmul.f32 %v1859_v18, %v3002_v8 }
  0xb2   :  { %v759_v17 = vmul.f32 %v2392_v58, %v2100_v9  ;;  %v771_v1 = vmul.f32 %v2392_v58, %v2996_v55  ;;  %v783_v29 = vmul.f32 %v2392_v58, %v2997_v54  ;;  %v941_v9 = vadd.f32 %v2966_v10, %v793_v43  ;;  %v3000_v43 = vld [vmem:[#allocation37_spill] sm:$0xff] }
  0xb3   :  { %v795_v26 = vmul.f32 %v2392_v58, %v2998_v38  ;;  %v577_v16 = vadd.f32 %v576_v14, %v575_v25  ;;  %v585_v30 = vrot.slane %v584_v28, 4  ;;  %1026 = vst [vmem:[%s2731_s3 + $0x158] sm:$0xff] %v942_v47  ;;  %v799_v3 = vmul.f32 %v1761_v37, %v3000_v43  ;;  %v3004_v55 = vld [vmem:[#allocation57_spill] sm:$0xff] }
  0xb4   :  { %v907_v34 = vadd.f32 %v2999_v61, %v759_v17  ;;  %v919_v44 = vadd.f32 %v2999_v61, %v771_v1  ;;  %v931_v20 = vadd.f32 %v2999_v61, %v783_v29  ;;  %1025 = vst [vmem:[%s2731_s3 + $0x150] sm:$0xff] %v941_v9  ;;  %v800_v25 = vmul.f32 %v1786_v45, %v3001_v35  ;;  %v3003_v17 = vld [vmem:[#allocation52_spill] sm:$0xff]  ;;  %v3005_v47 = vld [vmem:[#allocation17_spill] sm:$0xff] }
  0xb5   :  { %v943_v62 = vadd.f32 %v2999_v61, %v795_v26  ;;  %v601_v36 = vmul.f32 0.020408163, %v577_v16  ;;  %v802_v14 = vmul.f32 %v1954_v32, %v3003_v17  ;;  %v803_v1 = vmul.f32 %v2041_v39, %v3004_v55 }
  0xb6   :  { %991 = vst [vmem:[%s2731_s3 + $0x40] sm:$0xff] %v907_v34  ;;  %1003 = vst [vmem:[%s2731_s3 + $0xa0] sm:$0xff] %v919_v44  ;;  %v586_v54 = vadd.f32 %v585_v30, %v584_v28  ;;  %v947_v29 = vadd.f32 %v2919_v53, %v799_v3  ;;  %v948_v9 = vadd.f32 %v2923_v63, %v800_v25  ;;  %v3007_v3 = vld [vmem:[#allocation58_spill] sm:$0xff]  ;;  %v3008_v25 = vld [vmem:[#allocation4_spill] sm:$0xff] }
  0xb7   :  { %1015 = vst [vmem:[%s2731_s3 + $0x100] sm:$0xff] %v931_v20  ;;  %1027 = vst [vmem:[%s2731_s3 + $0x160] sm:$0xff] %v943_v62  ;;  %v804_v38 = vmul.f32 %v2093_v21, %v3005_v47  ;;  %v613_v26 = vadd.f32 0.001, %v601_v36  ;;  %v949_v34 = vadd.f32 %v2929_v51, %v801_v60  ;;  %v950_v16 = vadd.f32 %v2945_v24, %v802_v14  ;;  %v1090_v20 = vpop.eup %1089  ;;  %v3006_v62 = vld [vmem:[#allocation2_spill] sm:$0xff]  ;;  %v3010_v60 = vld [vmem:[#allocation40_spill] sm:$0xff] }
  0xb8   :  { %v951_v44 = vadd.f32 %v2954_v23, %v803_v1  ;;  %v587_v28 = vrot.slane %v586_v54, 2  ;;  %1031 = vst [vmem:[%s2731_s3 + $0x180] sm:$0xff] %v947_v29  ;;  %1032 = vst [vmem:[%s2731_s3 + $0x188] sm:$0xff] %v948_v9  ;;  %v805_v43 = vmul.f32 %v2162_v22, %v3006_v62  ;;  %v806_v35 = vmul.f32 %v2281_v49, %v3007_v3  ;;  %v3011_v14 = vld [vmem:[#allocation38_spill] sm:$0xff]  ;;  %v3012_v47 = vld [vmem:[#allocation44_spill] sm:$0xff] }
  0xb9   :  { %v952_v30 = vadd.f32 %v2964_v48, %v804_v38  ;;  %v3009_v36 = vrot.slane %v1856_v27, %v3008_v25  ;;  %1091 = vrsqrt.f32 %v613_v26  ;;  %1033 = vst [vmem:[%s2731_s3 + $0x190] sm:$0xff] %v949_v34  ;;  %1034 = vst [vmem:[%s2731_s3 + $0x198] sm:$0xff] %v950_v16  ;;  %v807_v17 = vmul.f32 %v2392_v58, %v3010_v60 }
  0xba   :  { %1035 = vst [vmem:[%s2731_s3 + $0x1a0] sm:$0xff] %v951_v44  ;;  %v811_v55 = vmul.f32 %v1761_v37, %v3011_v14  ;;  %v588_v1 = vadd.f32 %v587_v28, %v586_v54  ;;  %v953_v29 = vadd.f32 %v2966_v10, %v805_v43  ;;  %v954_v9 = vadd.f32 %v2979_v0, %v806_v35  ;;  %v3013_v44 = vld [vmem:[#allocation48_spill] sm:$0xff]  ;;  %v3015_v43 = vld [vmem:[#allocation25_spill] sm:$0xff] }
  0xbb   :  { %v700_v8 = vmul.f32 %v1090_v20, %v3009_v36  ;;  %1036 = vst [vmem:[%s2731_s3 + $0x1a8] sm:$0xff] %v952_v30  ;;  %v812_v38 = vmul.f32 %v1786_v45, %v3012_v47  ;;  %v955_v34 = vadd.f32 %v2999_v61, %v807_v17  ;;  %v813_v54 = vmul.f32 %v1859_v18, %v3013_v44  ;;  %v3014_v30 = vld [vmem:[#allocation53_spill] sm:$0xff]  ;;  %v3019_v44 = vld [vmem:[#allocation60_spill] sm:$0xff] }
  0xbc   :  { %v959_v16 = vadd.f32 %v2919_v53, %v811_v55  ;;  %v589_v20 = vrot.slane %v588_v1, 1  ;;  %1037 = vst [vmem:[%s2731_s3 + $0x1b0] sm:$0xff] %v953_v29  ;;  %1038 = vst [vmem:[%s2731_s3 + $0x1b8] sm:$0xff] %v954_v9  ;;  %v814_v62 = vmul.f32 %v1954_v32, %v3014_v30  ;;  %v815_v3 = vmul.f32 %v2041_v39, %v3015_v43  ;;  %v3017_v47 = vld [vmem:[#allocation21_spill] sm:$0xff] }
  0xbd   :  { %v2497_v26 = vrot.slane %v700_v8, %v2907_v59  ;;  %v960_v28 = vadd.f32 %v2923_v63, %v812_v38  ;;  %1039 = vst [vmem:[%s2731_s3 + $0x1c0] sm:$0xff] %v955_v34  ;;  %v816_v38 = vmul.f32 %v2093_v21, %v3017_v47  ;;  %v3018_v34 = vld [vmem:[#allocation20_spill] sm:$0xff] }
  0xbe   :  { %1043 = vst [vmem:[%s2731_s3 + $0x1e0] sm:$0xff] %v959_v16  ;;  %v590_v60 = vadd.f32 %v589_v20, %v588_v1  ;;  %v817_v16 = vmul.f32 %v2162_v22, %v3018_v34  ;;  %v3020_v20 = vld [vmem:[#allocation67_spill] sm:$0xff] }
  0xbf   :  { %v760_v35 = vmul.f32 %v2497_v26, %v2166_v4  ;;  %v772_v25 = vmul.f32 %v2497_v26, %v2169_v42  ;;  %v784_v36 = vmul.f32 %v2497_v26, %v2172_v41  ;;  %v796_v8 = vmul.f32 %v2497_v26, %v2175_v6  ;;  %1044 = vst [vmem:[%s2731_s3 + $0x1e8] sm:$0xff] %v960_v28  ;;  %v3016_v6 = vld [vmem:[#allocation26_spill] sm:$0xff] }
  0xc0   :  { %v808_v4 = vmul.f32 %v2497_v26, %v2183_v33  ;;  %v961_v42 = vadd.f32 %v2929_v51, %v813_v54  ;;  %v962_v41 = vadd.f32 %v2945_v24, %v814_v62  ;;  %v602_v1 = vmul.f32 0.020408163, %v590_v60 }
  0xc1   :  { %v908_v17 = vadd.f32 %v3016_v6, %v760_v35  ;;  %v920_v14 = vadd.f32 %v3016_v6, %v772_v25  ;;  %v932_v55 = vadd.f32 %v3016_v6, %v784_v36  ;;  %v944_v29 = vadd.f32 %v3016_v6, %v796_v8  ;;  %v3022_v25 = vld [vmem:[#allocation45_spill] sm:$0xff] }
  0xc2   :  { %v956_v9 = vadd.f32 %v3016_v6, %v808_v4  ;;  %1045 = vst [vmem:[%s2731_s3 + $0x1f0] sm:$0xff] %v961_v42  ;;  %1046 = vst [vmem:[%s2731_s3 + $0x1f8] sm:$0xff] %v962_v41  ;;  %v963_v33 = vadd.f32 %v2954_v23, %v815_v3  ;;  %v818_v54 = vmul.f32 %v2281_v49, %v3019_v44  ;;  %v614_v62 = vadd.f32 0.001, %v602_v1  ;;  %v3021_v3 = vld [vmem:[#allocation39_spill] sm:$0xff]  ;;  %v3023_v41 = vld [vmem:[#allocation5_spill] sm:$0xff] }
  0xc3   :  { %992 = vst [vmem:[%s2731_s3 + $0x48] sm:$0xff] %v908_v17  ;;  %1004 = vst [vmem:[%s2731_s3 + $0xa8] sm:$0xff] %v920_v14  ;;  %v819_v28 = vmul.f32 %v2392_v58, %v3020_v20  ;;  %v820_v30 = vmul.f32 %v2497_v26, %v2189_v19  ;;  %v964_v43 = vadd.f32 %v2964_v48, %v816_v38  ;;  %v1092_v8 = vpop.eup %1091  ;;  %v3027_v1 = vld [vmem:[#allocation13_spill] sm:$0xff] }
  0xc4   :  { %1016 = vst [vmem:[%s2731_s3 + $0x108] sm:$0xff] %v932_v55  ;;  %1028 = vst [vmem:[%s2731_s3 + $0x168] sm:$0xff] %v944_v29  ;;  %v823_v35 = vmul.f32 %v1761_v37, %v3021_v3  ;;  %v824_v36 = vmul.f32 %v1786_v45, %v3022_v25  ;;  %v965_v19 = vadd.f32 %v2966_v10, %v817_v16  ;;  %1093 = vrsqrt.f32 %v614_v62  ;;  %v3025_v55 = vld [vmem:[#allocation49_spill] sm:$0xff]  ;;  %v3033_v3 = vld [vmem:[#allocation6_spill] sm:$0xff] }
  0xc5   :  { %1040 = vst [vmem:[%s2731_s3 + $0x1c8] sm:$0xff] %v956_v9  ;;  %1047 = vst [vmem:[%s2731_s3 + $0x200] sm:$0xff] %v963_v33  ;;  %v966_v60 = vadd.f32 %v2979_v0, %v818_v54  ;;  %v967_v4 = vadd.f32 %v2999_v61, %v819_v28  ;;  %v968_v42 = vadd.f32 %v3016_v6, %v820_v30  ;;  %v3028_v33 = vld [vmem:[#allocation27_spill] sm:$0xff] }
  0xc6   :  { %v3024_v17 = vrot.slane %v1856_v27, %v3023_v41  ;;  %1048 = vst [vmem:[%s2731_s3 + $0x208] sm:$0xff] %v964_v43  ;;  %v971_v37 = vadd.f32 %v2919_v53, %v823_v35  ;;  %v972_v45 = vadd.f32 %v2923_v63, %v824_v36  ;;  %1049 = vst [vmem:[%s2731_s3 + $0x210] sm:$0xff] %v965_v19  ;;  %v3026_v63 = vld [vmem:[#allocation54_spill] sm:$0xff]  ;;  %v3035_v36 = vld [vmem:[#allocation28_spill] sm:$0xff] }
  0xc7   :  { %1050 = vst [vmem:[%s2731_s3 + $0x218] sm:$0xff] %v966_v60  ;;  %1051 = vst [vmem:[%s2731_s3 + $0x220] sm:$0xff] %v967_v4  ;;  %v825_v53 = vmul.f32 %v1859_v18, %v3025_v55  ;;  %v826_v29 = vmul.f32 %v1954_v32, %v3026_v63  ;;  %v827_v9 = vmul.f32 %v2041_v39, %v3027_v1  ;;  %v3029_v18 = vld [vmem:[#allocation3_spill] sm:$0xff]  ;;  %v3030_v32 = vld [vmem:[#allocation61_spill] sm:$0xff] }
  0xc8   :  { %v701_v14 = vmul.f32 %v1092_v8, %v3024_v17  ;;  %1052 = vst [vmem:[%s2731_s3 + $0x228] sm:$0xff] %v968_v42  ;;  %v828_v47 = vmul.f32 %v2093_v21, %v3028_v33  ;;  %1055 = vst [vmem:[%s2731_s3 + $0x240] sm:$0x1] %v971_v37  ;;  %v829_v34 = vmul.f32 %v2162_v22, %v3029_v18  ;;  %v3031_v39 = vld [vmem:[#allocation68_spill] sm:$0xff]  ;;  %v3036_v41 = vld [vmem:[#allocation18_spill] sm:$0xff] }
  0xc9   :  { %1056 = vst [vmem:[%s2731_s3 + $0x248] sm:$0x1] %v972_v45  ;;  %v830_v16 = vmul.f32 %v2281_v49, %v3030_v32  ;;  %v831_v44 = vmul.f32 %v2392_v58, %v3031_v39  ;;  %v973_v21 = vadd.f32 %v2929_v51, %v825_v53  ;;  %v974_v54 = vadd.f32 %v2945_v24, %v826_v29 }
  0xca   :  { %v746_v38 = vrot.slane %v701_v14, %v2907_v59  ;;  %v975_v20 = vadd.f32 %v2954_v23, %v827_v9  ;;  %v976_v28 = vadd.f32 %v2964_v48, %v828_v47  ;;  %v977_v51 = vadd.f32 %v2966_v10, %v829_v34  ;;  %v3032_v23 = vld [vmem:[#allocation66_spill] sm:$0xff] }
  0xcb   :  { %1057 = vst [vmem:[%s2731_s3 + $0x250] sm:$0x1] %v973_v21  ;;  %1058 = vst [vmem:[%s2731_s3 + $0x258] sm:$0x1] %v974_v54  ;;  %v978_v24 = vadd.f32 %v2979_v0, %v830_v16  ;;  %v979_v10 = vadd.f32 %v2999_v61, %v831_v44 }
  0xcc   :  { %v761_v30 = vmul.f32 %v746_v38, %v2236_v11  ;;  %v773_v62 = vmul.f32 %v746_v38, %v2239_v50  ;;  %v785_v22 = vmul.f32 %v746_v38, %v2245_v31  ;;  %v797_v43 = vmul.f32 %v746_v38, %v2248_v7  ;;  %1059 = vst [vmem:[%s2731_s3 + $0x260] sm:$0x1] %v975_v20 }
  0xcd   :  { %v809_v49 = vmul.f32 %v746_v38, %v2251_v15  ;;  %v821_v58 = vmul.f32 %v746_v38, %v2254_v40  ;;  %1060 = vst [vmem:[%s2731_s3 + $0x268] sm:$0x1] %v976_v28  ;;  %1061 = vst [vmem:[%s2731_s3 + $0x270] sm:$0x1] %v977_v51  ;;  %v832_v40 = vmul.f32 %v2497_v26, %v2192_v2 }
  0xce   :  { %v909_v48 = vadd.f32 %v3032_v23, %v761_v30  ;;  %v921_v11 = vadd.f32 %v3032_v23, %v773_v62  ;;  %v933_v50 = vadd.f32 %v3032_v23, %v785_v22  ;;  %v945_v31 = vadd.f32 %v3032_v23, %v797_v43  ;;  %1062 = vst [vmem:[%s2731_s3 + $0x278] sm:$0x1] %v978_v24  ;;  %v1094_v61 = vpop.eup %1093 }
  0xcf   :  { %v957_v7 = vadd.f32 %v3032_v23, %v809_v49  ;;  %v969_v15 = vadd.f32 %v3032_v23, %v821_v58  ;;  %v833_v0 = vmul.f32 %v746_v38, %v2260_v12  ;;  %1063 = vst [vmem:[%s2731_s3 + $0x280] sm:$0x1] %v979_v10  ;;  %v980_v2 = vadd.f32 %v3016_v6, %v832_v40 }
  0xd0   :  { %993 = vst [vmem:[%s2731_s3 + $0x50] sm:$0xff] %v909_v48  ;;  %1005 = vst [vmem:[%s2731_s3 + $0xb0] sm:$0xff] %v921_v11  ;;  %v3034_v12 = vrot.slane %v1856_v27, %v3033_v3  ;;  %v886_v6 = vrot.slane %v3035_v36, %v3033_v3 }
  0xd1   :  { %1017 = vst [vmem:[%s2731_s3 + $0x110] sm:$0xff] %v933_v50  ;;  %1029 = vst [vmem:[%s2731_s3 + $0x170] sm:$0xff] %v945_v31  ;;  %v981_v26 = vadd.f32 %v3032_v23, %v833_v0 }
  0xd2   :  { %1041 = vst [vmem:[%s2731_s3 + $0x1d0] sm:$0xff] %v957_v7  ;;  %1053 = vst [vmem:[%s2731_s3 + $0x230] sm:$0xff] %v969_v15  ;;  %v702_v35 = vmul.f32 %v1094_v61, %v3034_v12 }
  0xd3   :  { %1064 = vst [vmem:[%s2731_s3 + $0x288] sm:$0x1] %v980_v2  ;;  %1065 = vst [vmem:[%s2731_s3 + $0x290] sm:$0x1] %v981_v26 }
  0xd4   :  { %v750_v25 = vrot.slane %v702_v35, %v2907_v59 }
  0xd6   :  { %v762_v8 = vmul.f32 %v750_v25, %v2303_v56  ;;  %v774_v19 = vmul.f32 %v750_v25, %v2306_v57  ;;  %v786_v27 = vmul.f32 %v750_v25, %v2309_v13  ;;  %v798_v60 = vmul.f32 %v750_v25, %v2312_v52 }
  0xd7   :  { %v810_v4 = vmul.f32 %v750_v25, %v2315_v5  ;;  %v822_v42 = vmul.f32 %v750_v25, %v2327_v46  ;;  %v834_v17 = vmul.f32 %v750_v25, %v3036_v41 }
  0xd8   :  { %v910_v14 = vadd.f32 %v886_v6, %v762_v8  ;;  %v922_v37 = vadd.f32 %v886_v6, %v774_v19  ;;  %v934_v59 = vadd.f32 %v886_v6, %v786_v27  ;;  %v946_v45 = vadd.f32 %v886_v6, %v798_v60 }
  0xd9   :  { %v958_v55 = vadd.f32 %v886_v6, %v810_v4  ;;  %v970_v53 = vadd.f32 %v886_v6, %v822_v42  ;;  %v982_v63 = vadd.f32 %v886_v6, %v834_v17 }
  0xda   :  { %994 = vst [vmem:[%s2731_s3 + $0x58] sm:$0xff] %v910_v14  ;;  %1006 = vst [vmem:[%s2731_s3 + $0xb8] sm:$0xff] %v922_v37 }
  0xdb   :  { %1018 = vst [vmem:[%s2731_s3 + $0x118] sm:$0xff] %v934_v59  ;;  %1030 = vst [vmem:[%s2731_s3 + $0x178] sm:$0xff] %v946_v45 }
  0xdc   :  { %1042 = vst [vmem:[%s2731_s3 + $0x1d8] sm:$0xff] %v958_v55  ;;  %1054 = vst [vmem:[%s2731_s3 + $0x238] sm:$0xff] %v970_v53 }
  0xdd   :  { %1066 = vst [vmem:[%s2731_s3 + $0x298] sm:$0x1] %v982_v63 }

</bundles_post_ra>
